<compile_context>
chip_gen: v7x
topology: tpu7x:2x2x1
jax: 0.10.0
libtpu: 0.0.40
codegen_flags: <defaults>
</compile_context>

<pallas_src>
import jax
import jax.numpy as jnp
from jax import lax
from jax.experimental import pallas as pl
from jax.experimental.pallas import tpu as pltpu


def _round_up(x, m):
    return (x + m - 1) // m * m


def dwconv3d_forward(x, dw_w, dw_b, pw_w, pw_b, *, kernel_size=3, padding=1):
    """Fused depthwise-3D + pointwise-1x1x1 conv (stride=1, dilation=1, zero pad).

    x:    [N, Cin, D, H, W]     (NCDHW, PyTorch layout)
    dw_w: [Cin, 1, K, K, K]     depthwise Conv3d weight (groups=Cin)
    dw_b: [Cin]
    pw_w: [Cout, Cin, 1, 1, 1]  pointwise Conv3d weight
    pw_b: [Cout]
    returns [N, Cout, Do, Ho, Wo] with Xo = X + 2*padding - K + 1
    """
    N, C, D, H, W = x.shape
    K, P = kernel_size, padding
    Cout = pw_w.shape[0]

    Dp, Hp, Wpad = D + 2 * P, H + 2 * P, W + 2 * P
    Do, Ho, Wo = Dp - K + 1, Hp - K + 1, Wpad - K + 1
    HW = Hp * Wpad                                   # one padded (H, W) plane, flat

    # Channel dims sublane-aligned (f32 path -> multiples of 8).
    Cp = _round_up(max(C, 8), 8)
    Op = _round_up(max(Cout, 8), 8)
    # Lane-aligned flat plane lengths: output lanes per D-plane, and input lanes
    # per D-plane including the in-plane read slack for the (kh, kw) taps.
    plane_out = _round_up(HW, 128)
    plane_ext = _round_up(plane_out + (K - 1) * (Wpad + 1), 128)

    # ---- layout plumbing (pure XLA, ~1x input size: NO im2col) ---------------
    xp = jnp.pad(x.astype(jnp.float32), ((0, 0), (0, 0), (P, P), (P, P), (P, P)))
    xr = xp.reshape(N, C, Dp, HW).transpose(0, 2, 1, 3)          # [N, Dp, C, HW]
    xr = jnp.pad(xr, ((0, 0), (0, 0), (0, Cp - C), (0, plane_ext - HW)))

    wd = jnp.pad(dw_w.reshape(C, K ** 3).astype(jnp.float32), ((0, Cp - C), (0, 0)))
    wp2 = pw_w.reshape(Cout, C).astype(jnp.float32)
    # Fold the depthwise bias into the pointwise bias (linearity of the 1x1x1 conv).
    bp_eff = wp2 @ dw_b.astype(jnp.float32) + pw_b.astype(jnp.float32)
    wp_p = jnp.pad(wp2, ((0, Op - Cout), (0, Cp - C)))            # [Op, Cp]
    bp_p = jnp.pad(bp_eff.reshape(Cout, 1), ((0, Op - Cout), (0, 0)))

    # ---- fused Pallas kernel --------------------------------------------------
    def kernel(*refs):
        x_planes = refs[:K]                       # K refs, each (1, 1, Cp, plane_ext)
        wd_ref, wp_ref, bp_ref, o_ref = refs[K:]

        wdv = wd_ref[...]                                         # [Cp, K^3]
        acc = jnp.zeros((Cp, plane_out), jnp.float32)             # register-resident
        t = 0
        for kd in range(K):
            win = x_planes[kd][0, 0]                              # [Cp, plane_ext]
            for kh in range(K):
                for kw in range(K):
                    off = kh * Wpad + kw                          # static in-plane tap
                    tap = win[:, off:off + plane_out]             # vreg lane shift
                    acc = acc + wdv[:, t:t + 1] * tap             # VPU madd
                    t += 1

        if Cp <= 32:
            # Tiny channel counts: pointwise conv on the VPU (skip the MXU).
            wpv = wp_ref[...]
            out = jnp.zeros((Op, plane_out), jnp.float32)
            for c in range(Cp):
                out = out + wpv[:, c:c + 1] * acc[c:c + 1, :]
        else:
            out = jnp.dot(wp_ref[...], acc,
                          preferred_element_type=jnp.float32,
                          precision=lax.Precision.HIGHEST)
        out = out + bp_ref[...]
        o_ref[0, 0] = out.astype(o_ref.dtype)

    in_specs = [
        pl.BlockSpec((1, 1, Cp, plane_ext),
                     (lambda n, j, kd=kd: (n, j + kd, 0, 0)))     # halo via K streams
        for kd in range(K)
    ] + [
        pl.BlockSpec((Cp, K ** 3), lambda n, j: (0, 0)),          # depthwise weights
        pl.BlockSpec((Op, Cp), lambda n, j: (0, 0)),              # pointwise weights
        pl.BlockSpec((Op, 1), lambda n, j: (0, 0)),               # folded bias
    ]
    out_spec = pl.BlockSpec((1, 1, Op, plane_out), lambda n, j: (n, j, 0, 0))

    out4 = pl.pallas_call(
        kernel,
        out_shape=jax.ShapeDtypeStruct((N, Do, Op, plane_out), jnp.float32),
        grid_spec=pltpu.PrefetchScalarGridSpec(
            num_scalar_prefetch=0,
            grid=(N, Do),
            in_specs=in_specs,
            out_specs=out_spec,
        ),
        compiler_params=pltpu.CompilerParams(
            dimension_semantics=("parallel", "parallel")),
    )(*([xr] * K), wd, wp_p, bp_p)

    # Strip channel / lane padding and the row-padded garbage columns.
    out = out4[:, :, :Cout, :HW].reshape(N, Do, Cout, Hp, Wpad)
    out = out[:, :, :, :Ho, :Wo].transpose(0, 2, 1, 3, 4)         # [N, Cout, Do, Ho, Wo]
    return out


# ---- pure-XLA reference for verification --------------------------------------

def ref_forward(x, dw_w, dw_b, pw_w, pw_b, padding):
    dn = lax.conv_dimension_numbers(x.shape, dw_w.shape, ("NCDHW", "OIDHW", "NCDHW"))
    h = lax.conv_general_dilated(x, dw_w, (1, 1, 1), [(padding, padding)] * 3,
                                 dimension_numbers=dn,
                                 feature_group_count=x.shape[1],
                                 precision=lax.Precision.HIGHEST)
    h = h + dw_b.reshape(1, -1, 1, 1, 1)
    dn2 = lax.conv_dimension_numbers(h.shape, pw_w.shape, ("NCDHW", "OIDHW", "NCDHW"))
    o = lax.conv_general_dilated(h, pw_w, (1, 1, 1), [(0, 0)] * 3,
                                 dimension_numbers=dn2,
                                 precision=lax.Precision.HIGHEST)
    return o + pw_b.reshape(1, -1, 1, 1, 1)


# ---- main ----------------------------------------------------------------------

if __name__ == "__main__":
    key = jax.random.PRNGKey(0)
    N, Cin, Cout, D, H, W = 2, 4, 8, 8, 16, 16
    K, P = 3, 1
    k1, k2, k3, k4, k5 = jax.random.split(key, 5)

    x = jax.random.normal(k1, (N, Cin, D, H, W), jnp.float32)

    # deterministic "module __init__" parameters (Conv3d shapes from the module)
    fan_dw = K ** 3                     # depthwise fan_in = (Cin/groups) * K^3 = K^3
    dw_w = jax.random.uniform(k2, (Cin, 1, K, K, K), jnp.float32, -1.0, 1.0) / jnp.sqrt(fan_dw)
    dw_b = jax.random.uniform(k3, (Cin,), jnp.float32, -1.0, 1.0) / jnp.sqrt(fan_dw)
    fan_pw = Cin                        # pointwise fan_in = Cin * 1^3
    pw_w = jax.random.uniform(k4, (Cout, Cin, 1, 1, 1), jnp.float32, -1.0, 1.0) / jnp.sqrt(fan_pw)
    pw_b = jax.random.uniform(k5, (Cout,), jnp.float32, -1.0, 1.0) / jnp.sqrt(fan_pw)

    out = dwconv3d_forward(x, dw_w, dw_b, pw_w, pw_b, kernel_size=K, padding=P)
    out = jax.block_until_ready(out)

    ref = ref_forward(x, dw_w, dw_b, pw_w, pw_b, P)
    assert out.shape == ref.shape, (out.shape, ref.shape)
    assert jnp.allclose(out, ref, atol=1e-4, rtol=1e-4), "mismatch vs reference"

    print("KERNEL_OK")
</pallas_src>

<mosaic_0001>
module attributes {stable_mosaic.version = 11 : i64} {
  func.func @kernel(%arg0: i32, %arg1: i32, %arg2: memref<1x1x8x512xf32, #tpu.memory_space<vmem>>, %arg3: memref<1x1x8x512xf32, #tpu.memory_space<vmem>>, %arg4: memref<1x1x8x512xf32, #tpu.memory_space<vmem>>, %arg5: memref<8x27xf32, #tpu.memory_space<vmem>>, %arg6: memref<8x8xf32, #tpu.memory_space<vmem>>, %arg7: memref<8x1xf32, #tpu.memory_space<vmem>>, %arg8: memref<1x1x8x384xf32, #tpu.memory_space<vmem>>) attributes {dimension_semantics = [#tpu.dimension_semantics<parallel>, #tpu.dimension_semantics<parallel>], iteration_bounds = array<i64: 2, 8>, scalar_prefetch = 0 : i64, scratch_operands = 0 : i64, tpu.core_type = #tpu.core_type<tc>, window_params = [{transform_indices = @transform_0, window_bounds = array<i64: 1, 1, 8, 512>}, {transform_indices = @transform_1, window_bounds = array<i64: 1, 1, 8, 512>}, {transform_indices = @transform_2, window_bounds = array<i64: 1, 1, 8, 512>}, {pipeline_mode = #tpu.pipeline_mode<synchronous>, transform_indices = @transform_3, window_bounds = array<i64: 8, 27>}, {pipeline_mode = #tpu.pipeline_mode<synchronous>, transform_indices = @transform_4, window_bounds = array<i64: 8, 8>}, {pipeline_mode = #tpu.pipeline_mode<synchronous>, transform_indices = @transform_5, window_bounds = array<i64: 8, 1>}, {transform_indices = @transform_6, window_bounds = array<i64: 1, 1, 8, 384>}]} {
    %c0 = arith.constant 0 : index
    %c0_0 = arith.constant 0 : index
    %0 = vector.load %arg5[%c0, %c0_0] : memref<8x27xf32, #tpu.memory_space<vmem>>, vector<8x27xf32>
    %cst = arith.constant 0.000000e+00 : f32
    %1 = vector.broadcast %cst : f32 to vector<8x384xf32>
    %c0_1 = arith.constant 0 : index
    %c0_2 = arith.constant 0 : index
    %c0_3 = arith.constant 0 : index
    %c0_4 = arith.constant 0 : index
    %2 = vector.load %arg2[%c0_1, %c0_2, %c0_3, %c0_4] : memref<1x1x8x512xf32, #tpu.memory_space<vmem>>, vector<1x1x8x512xf32>
    %3 = vector.shape_cast %2 : vector<1x1x8x512xf32> to vector<8x512xf32>
    %4 = vector.extract_strided_slice %3 {offsets = [0, 0], sizes = [8, 384], strides = [1, 1]} : vector<8x512xf32> to vector<8x384xf32>
    %5 = vector.extract_strided_slice %0 {offsets = [0, 0], sizes = [8, 1], strides = [1, 1]} : vector<8x27xf32> to vector<8x1xf32>
    %6 = vector.broadcast %5 : vector<8x1xf32> to vector<8x384xf32>
    %7 = arith.mulf %6, %4 : vector<8x384xf32>
    %8 = arith.addf %1, %7 : vector<8x384xf32>
    %9 = vector.extract_strided_slice %3 {offsets = [0, 1], sizes = [8, 384], strides = [1, 1]} : vector<8x512xf32> to vector<8x384xf32>
    %10 = vector.extract_strided_slice %0 {offsets = [0, 1], sizes = [8, 1], strides = [1, 1]} : vector<8x27xf32> to vector<8x1xf32>
    %11 = vector.broadcast %10 : vector<8x1xf32> to vector<8x384xf32>
    %12 = arith.mulf %11, %9 : vector<8x384xf32>
    %13 = arith.addf %8, %12 : vector<8x384xf32>
    %14 = vector.extract_strided_slice %3 {offsets = [0, 2], sizes = [8, 384], strides = [1, 1]} : vector<8x512xf32> to vector<8x384xf32>
    %15 = vector.extract_strided_slice %0 {offsets = [0, 2], sizes = [8, 1], strides = [1, 1]} : vector<8x27xf32> to vector<8x1xf32>
    %16 = vector.broadcast %15 : vector<8x1xf32> to vector<8x384xf32>
    %17 = arith.mulf %16, %14 : vector<8x384xf32>
    %18 = arith.addf %13, %17 : vector<8x384xf32>
    %19 = vector.extract_strided_slice %3 {offsets = [0, 18], sizes = [8, 384], strides = [1, 1]} : vector<8x512xf32> to vector<8x384xf32>
    %20 = vector.extract_strided_slice %0 {offsets = [0, 3], sizes = [8, 1], strides = [1, 1]} : vector<8x27xf32> to vector<8x1xf32>
    %21 = vector.broadcast %20 : vector<8x1xf32> to vector<8x384xf32>
    %22 = arith.mulf %21, %19 : vector<8x384xf32>
    %23 = arith.addf %18, %22 : vector<8x384xf32>
    %24 = vector.extract_strided_slice %3 {offsets = [0, 19], sizes = [8, 384], strides = [1, 1]} : vector<8x512xf32> to vector<8x384xf32>
    %25 = vector.extract_strided_slice %0 {offsets = [0, 4], sizes = [8, 1], strides = [1, 1]} : vector<8x27xf32> to vector<8x1xf32>
    %26 = vector.broadcast %25 : vector<8x1xf32> to vector<8x384xf32>
    %27 = arith.mulf %26, %24 : vector<8x384xf32>
    %28 = arith.addf %23, %27 : vector<8x384xf32>
    %29 = vector.extract_strided_slice %3 {offsets = [0, 20], sizes = [8, 384], strides = [1, 1]} : vector<8x512xf32> to vector<8x384xf32>
    %30 = vector.extract_strided_slice %0 {offsets = [0, 5], sizes = [8, 1], strides = [1, 1]} : vector<8x27xf32> to vector<8x1xf32>
    %31 = vector.broadcast %30 : vector<8x1xf32> to vector<8x384xf32>
    %32 = arith.mulf %31, %29 : vector<8x384xf32>
    %33 = arith.addf %28, %32 : vector<8x384xf32>
    %34 = vector.extract_strided_slice %3 {offsets = [0, 36], sizes = [8, 384], strides = [1, 1]} : vector<8x512xf32> to vector<8x384xf32>
    %35 = vector.extract_strided_slice %0 {offsets = [0, 6], sizes = [8, 1], strides = [1, 1]} : vector<8x27xf32> to vector<8x1xf32>
    %36 = vector.broadcast %35 : vector<8x1xf32> to vector<8x384xf32>
    %37 = arith.mulf %36, %34 : vector<8x384xf32>
    %38 = arith.addf %33, %37 : vector<8x384xf32>
    %39 = vector.extract_strided_slice %3 {offsets = [0, 37], sizes = [8, 384], strides = [1, 1]} : vector<8x512xf32> to vector<8x384xf32>
    %40 = vector.extract_strided_slice %0 {offsets = [0, 7], sizes = [8, 1], strides = [1, 1]} : vector<8x27xf32> to vector<8x1xf32>
    %41 = vector.broadcast %40 : vector<8x1xf32> to vector<8x384xf32>
    %42 = arith.mulf %41, %39 : vector<8x384xf32>
    %43 = arith.addf %38, %42 : vector<8x384xf32>
    %44 = vector.extract_strided_slice %3 {offsets = [0, 38], sizes = [8, 384], strides = [1, 1]} : vector<8x512xf32> to vector<8x384xf32>
    %45 = vector.extract_strided_slice %0 {offsets = [0, 8], sizes = [8, 1], strides = [1, 1]} : vector<8x27xf32> to vector<8x1xf32>
    %46 = vector.broadcast %45 : vector<8x1xf32> to vector<8x384xf32>
    %47 = arith.mulf %46, %44 : vector<8x384xf32>
    %48 = arith.addf %43, %47 : vector<8x384xf32>
    %c0_5 = arith.constant 0 : index
    %c0_6 = arith.constant 0 : index
    %c0_7 = arith.constant 0 : index
    %c0_8 = arith.constant 0 : index
    %49 = vector.load %arg3[%c0_5, %c0_6, %c0_7, %c0_8] : memref<1x1x8x512xf32, #tpu.memory_space<vmem>>, vector<1x1x8x512xf32>
    %50 = vector.shape_cast %49 : vector<1x1x8x512xf32> to vector<8x512xf32>
    %51 = vector.extract_strided_slice %50 {offsets = [0, 0], sizes = [8, 384], strides = [1, 1]} : vector<8x512xf32> to vector<8x384xf32>
    %52 = vector.extract_strided_slice %0 {offsets = [0, 9], sizes = [8, 1], strides = [1, 1]} : vector<8x27xf32> to vector<8x1xf32>
    %53 = vector.broadcast %52 : vector<8x1xf32> to vector<8x384xf32>
    %54 = arith.mulf %53, %51 : vector<8x384xf32>
    %55 = arith.addf %48, %54 : vector<8x384xf32>
    %56 = vector.extract_strided_slice %50 {offsets = [0, 1], sizes = [8, 384], strides = [1, 1]} : vector<8x512xf32> to vector<8x384xf32>
    %57 = vector.extract_strided_slice %0 {offsets = [0, 10], sizes = [8, 1], strides = [1, 1]} : vector<8x27xf32> to vector<8x1xf32>
    %58 = vector.broadcast %57 : vector<8x1xf32> to vector<8x384xf32>
    %59 = arith.mulf %58, %56 : vector<8x384xf32>
    %60 = arith.addf %55, %59 : vector<8x384xf32>
    %61 = vector.extract_strided_slice %50 {offsets = [0, 2], sizes = [8, 384], strides = [1, 1]} : vector<8x512xf32> to vector<8x384xf32>
    %62 = vector.extract_strided_slice %0 {offsets = [0, 11], sizes = [8, 1], strides = [1, 1]} : vector<8x27xf32> to vector<8x1xf32>
    %63 = vector.broadcast %62 : vector<8x1xf32> to vector<8x384xf32>
    %64 = arith.mulf %63, %61 : vector<8x384xf32>
    %65 = arith.addf %60, %64 : vector<8x384xf32>
    %66 = vector.extract_strided_slice %50 {offsets = [0, 18], sizes = [8, 384], strides = [1, 1]} : vector<8x512xf32> to vector<8x384xf32>
    %67 = vector.extract_strided_slice %0 {offsets = [0, 12], sizes = [8, 1], strides = [1, 1]} : vector<8x27xf32> to vector<8x1xf32>
    %68 = vector.broadcast %67 : vector<8x1xf32> to vector<8x384xf32>
    %69 = arith.mulf %68, %66 : vector<8x384xf32>
    %70 = arith.addf %65, %69 : vector<8x384xf32>
    %71 = vector.extract_strided_slice %50 {offsets = [0, 19], sizes = [8, 384], strides = [1, 1]} : vector<8x512xf32> to vector<8x384xf32>
    %72 = vector.extract_strided_slice %0 {offsets = [0, 13], sizes = [8, 1], strides = [1, 1]} : vector<8x27xf32> to vector<8x1xf32>
    %73 = vector.broadcast %72 : vector<8x1xf32> to vector<8x384xf32>
    %74 = arith.mulf %73, %71 : vector<8x384xf32>
    %75 = arith.addf %70, %74 : vector<8x384xf32>
    %76 = vector.extract_strided_slice %50 {offsets = [0, 20], sizes = [8, 384], strides = [1, 1]} : vector<8x512xf32> to vector<8x384xf32>
    %77 = vector.extract_strided_slice %0 {offsets = [0, 14], sizes = [8, 1], strides = [1, 1]} : vector<8x27xf32> to vector<8x1xf32>
    %78 = vector.broadcast %77 : vector<8x1xf32> to vector<8x384xf32>
    %79 = arith.mulf %78, %76 : vector<8x384xf32>
    %80 = arith.addf %75, %79 : vector<8x384xf32>
    %81 = vector.extract_strided_slice %50 {offsets = [0, 36], sizes = [8, 384], strides = [1, 1]} : vector<8x512xf32> to vector<8x384xf32>
    %82 = vector.extract_strided_slice %0 {offsets = [0, 15], sizes = [8, 1], strides = [1, 1]} : vector<8x27xf32> to vector<8x1xf32>
    %83 = vector.broadcast %82 : vector<8x1xf32> to vector<8x384xf32>
    %84 = arith.mulf %83, %81 : vector<8x384xf32>
    %85 = arith.addf %80, %84 : vector<8x384xf32>
    %86 = vector.extract_strided_slice %50 {offsets = [0, 37], sizes = [8, 384], strides = [1, 1]} : vector<8x512xf32> to vector<8x384xf32>
    %87 = vector.extract_strided_slice %0 {offsets = [0, 16], sizes = [8, 1], strides = [1, 1]} : vector<8x27xf32> to vector<8x1xf32>
    %88 = vector.broadcast %87 : vector<8x1xf32> to vector<8x384xf32>
    %89 = arith.mulf %88, %86 : vector<8x384xf32>
    %90 = arith.addf %85, %89 : vector<8x384xf32>
    %91 = vector.extract_strided_slice %50 {offsets = [0, 38], sizes = [8, 384], strides = [1, 1]} : vector<8x512xf32> to vector<8x384xf32>
    %92 = vector.extract_strided_slice %0 {offsets = [0, 17], sizes = [8, 1], strides = [1, 1]} : vector<8x27xf32> to vector<8x1xf32>
    %93 = vector.broadcast %92 : vector<8x1xf32> to vector<8x384xf32>
    %94 = arith.mulf %93, %91 : vector<8x384xf32>
    %95 = arith.addf %90, %94 : vector<8x384xf32>
    %c0_9 = arith.constant 0 : index
    %c0_10 = arith.constant 0 : index
    %c0_11 = arith.constant 0 : index
    %c0_12 = arith.constant 0 : index
    %96 = vector.load %arg4[%c0_9, %c0_10, %c0_11, %c0_12] : memref<1x1x8x512xf32, #tpu.memory_space<vmem>>, vector<1x1x8x512xf32>
    %97 = vector.shape_cast %96 : vector<1x1x8x512xf32> to vector<8x512xf32>
    %98 = vector.extract_strided_slice %97 {offsets = [0, 0], sizes = [8, 384], strides = [1, 1]} : vector<8x512xf32> to vector<8x384xf32>
    %99 = vector.extract_strided_slice %0 {offsets = [0, 18], sizes = [8, 1], strides = [1, 1]} : vector<8x27xf32> to vector<8x1xf32>
    %100 = vector.broadcast %99 : vector<8x1xf32> to vector<8x384xf32>
    %101 = arith.mulf %100, %98 : vector<8x384xf32>
    %102 = arith.addf %95, %101 : vector<8x384xf32>
    %103 = vector.extract_strided_slice %97 {offsets = [0, 1], sizes = [8, 384], strides = [1, 1]} : vector<8x512xf32> to vector<8x384xf32>
    %104 = vector.extract_strided_slice %0 {offsets = [0, 19], sizes = [8, 1], strides = [1, 1]} : vector<8x27xf32> to vector<8x1xf32>
    %105 = vector.broadcast %104 : vector<8x1xf32> to vector<8x384xf32>
    %106 = arith.mulf %105, %103 : vector<8x384xf32>
    %107 = arith.addf %102, %106 : vector<8x384xf32>
    %108 = vector.extract_strided_slice %97 {offsets = [0, 2], sizes = [8, 384], strides = [1, 1]} : vector<8x512xf32> to vector<8x384xf32>
    %109 = vector.extract_strided_slice %0 {offsets = [0, 20], sizes = [8, 1], strides = [1, 1]} : vector<8x27xf32> to vector<8x1xf32>
    %110 = vector.broadcast %109 : vector<8x1xf32> to vector<8x384xf32>
    %111 = arith.mulf %110, %108 : vector<8x384xf32>
    %112 = arith.addf %107, %111 : vector<8x384xf32>
    %113 = vector.extract_strided_slice %97 {offsets = [0, 18], sizes = [8, 384], strides = [1, 1]} : vector<8x512xf32> to vector<8x384xf32>
    %114 = vector.extract_strided_slice %0 {offsets = [0, 21], sizes = [8, 1], strides = [1, 1]} : vector<8x27xf32> to vector<8x1xf32>
    %115 = vector.broadcast %114 : vector<8x1xf32> to vector<8x384xf32>
    %116 = arith.mulf %115, %113 : vector<8x384xf32>
    %117 = arith.addf %112, %116 : vector<8x384xf32>
    %118 = vector.extract_strided_slice %97 {offsets = [0, 19], sizes = [8, 384], strides = [1, 1]} : vector<8x512xf32> to vector<8x384xf32>
    %119 = vector.extract_strided_slice %0 {offsets = [0, 22], sizes = [8, 1], strides = [1, 1]} : vector<8x27xf32> to vector<8x1xf32>
    %120 = vector.broadcast %119 : vector<8x1xf32> to vector<8x384xf32>
    %121 = arith.mulf %120, %118 : vector<8x384xf32>
    %122 = arith.addf %117, %121 : vector<8x384xf32>
    %123 = vector.extract_strided_slice %97 {offsets = [0, 20], sizes = [8, 384], strides = [1, 1]} : vector<8x512xf32> to vector<8x384xf32>
    %124 = vector.extract_strided_slice %0 {offsets = [0, 23], sizes = [8, 1], strides = [1, 1]} : vector<8x27xf32> to vector<8x1xf32>
    %125 = vector.broadcast %124 : vector<8x1xf32> to vector<8x384xf32>
    %126 = arith.mulf %125, %123 : vector<8x384xf32>
    %127 = arith.addf %122, %126 : vector<8x384xf32>
    %128 = vector.extract_strided_slice %97 {offsets = [0, 36], sizes = [8, 384], strides = [1, 1]} : vector<8x512xf32> to vector<8x384xf32>
    %129 = vector.extract_strided_slice %0 {offsets = [0, 24], sizes = [8, 1], strides = [1, 1]} : vector<8x27xf32> to vector<8x1xf32>
    %130 = vector.broadcast %129 : vector<8x1xf32> to vector<8x384xf32>
    %131 = arith.mulf %130, %128 : vector<8x384xf32>
    %132 = arith.addf %127, %131 : vector<8x384xf32>
    %133 = vector.extract_strided_slice %97 {offsets = [0, 37], sizes = [8, 384], strides = [1, 1]} : vector<8x512xf32> to vector<8x384xf32>
    %134 = vector.extract_strided_slice %0 {offsets = [0, 25], sizes = [8, 1], strides = [1, 1]} : vector<8x27xf32> to vector<8x1xf32>
    %135 = vector.broadcast %134 : vector<8x1xf32> to vector<8x384xf32>
    %136 = arith.mulf %135, %133 : vector<8x384xf32>
    %137 = arith.addf %132, %136 : vector<8x384xf32>
    %138 = vector.extract_strided_slice %97 {offsets = [0, 38], sizes = [8, 384], strides = [1, 1]} : vector<8x512xf32> to vector<8x384xf32>
    %139 = vector.extract_strided_slice %0 {offsets = [0, 26], sizes = [8, 1], strides = [1, 1]} : vector<8x27xf32> to vector<8x1xf32>
    %140 = vector.broadcast %139 : vector<8x1xf32> to vector<8x384xf32>
    %141 = arith.mulf %140, %138 : vector<8x384xf32>
    %142 = arith.addf %137, %141 : vector<8x384xf32>
    %c0_13 = arith.constant 0 : index
    %c0_14 = arith.constant 0 : index
    %143 = vector.load %arg6[%c0_13, %c0_14] : memref<8x8xf32, #tpu.memory_space<vmem>>, vector<8x8xf32>
    %cst_15 = arith.constant 0.000000e+00 : f32
    %144 = vector.broadcast %cst_15 : f32 to vector<8x384xf32>
    %145 = vector.extract_strided_slice %143 {offsets = [0, 0], sizes = [8, 1], strides = [1, 1]} : vector<8x8xf32> to vector<8x1xf32>
    %146 = vector.extract_strided_slice %142 {offsets = [0, 0], sizes = [1, 384], strides = [1, 1]} : vector<8x384xf32> to vector<1x384xf32>
    %147 = vector.broadcast %145 : vector<8x1xf32> to vector<8x384xf32>
    %148 = vector.broadcast %146 : vector<1x384xf32> to vector<8x384xf32>
    %149 = arith.mulf %147, %148 : vector<8x384xf32>
    %150 = arith.addf %144, %149 : vector<8x384xf32>
    %151 = vector.extract_strided_slice %143 {offsets = [0, 1], sizes = [8, 1], strides = [1, 1]} : vector<8x8xf32> to vector<8x1xf32>
    %152 = vector.extract_strided_slice %142 {offsets = [1, 0], sizes = [1, 384], strides = [1, 1]} : vector<8x384xf32> to vector<1x384xf32>
    %153 = vector.broadcast %151 : vector<8x1xf32> to vector<8x384xf32>
    %154 = vector.broadcast %152 : vector<1x384xf32> to vector<8x384xf32>
    %155 = arith.mulf %153, %154 : vector<8x384xf32>
    %156 = arith.addf %150, %155 : vector<8x384xf32>
    %157 = vector.extract_strided_slice %143 {offsets = [0, 2], sizes = [8, 1], strides = [1, 1]} : vector<8x8xf32> to vector<8x1xf32>
    %158 = vector.extract_strided_slice %142 {offsets = [2, 0], sizes = [1, 384], strides = [1, 1]} : vector<8x384xf32> to vector<1x384xf32>
    %159 = vector.broadcast %157 : vector<8x1xf32> to vector<8x384xf32>
    %160 = vector.broadcast %158 : vector<1x384xf32> to vector<8x384xf32>
    %161 = arith.mulf %159, %160 : vector<8x384xf32>
    %162 = arith.addf %156, %161 : vector<8x384xf32>
    %163 = vector.extract_strided_slice %143 {offsets = [0, 3], sizes = [8, 1], strides = [1, 1]} : vector<8x8xf32> to vector<8x1xf32>
    %164 = vector.extract_strided_slice %142 {offsets = [3, 0], sizes = [1, 384], strides = [1, 1]} : vector<8x384xf32> to vector<1x384xf32>
    %165 = vector.broadcast %163 : vector<8x1xf32> to vector<8x384xf32>
    %166 = vector.broadcast %164 : vector<1x384xf32> to vector<8x384xf32>
    %167 = arith.mulf %165, %166 : vector<8x384xf32>
    %168 = arith.addf %162, %167 : vector<8x384xf32>
    %169 = vector.extract_strided_slice %143 {offsets = [0, 4], sizes = [8, 1], strides = [1, 1]} : vector<8x8xf32> to vector<8x1xf32>
    %170 = vector.extract_strided_slice %142 {offsets = [4, 0], sizes = [1, 384], strides = [1, 1]} : vector<8x384xf32> to vector<1x384xf32>
    %171 = vector.broadcast %169 : vector<8x1xf32> to vector<8x384xf32>
    %172 = vector.broadcast %170 : vector<1x384xf32> to vector<8x384xf32>
    %173 = arith.mulf %171, %172 : vector<8x384xf32>
    %174 = arith.addf %168, %173 : vector<8x384xf32>
    %175 = vector.extract_strided_slice %143 {offsets = [0, 5], sizes = [8, 1], strides = [1, 1]} : vector<8x8xf32> to vector<8x1xf32>
    %176 = vector.extract_strided_slice %142 {offsets = [5, 0], sizes = [1, 384], strides = [1, 1]} : vector<8x384xf32> to vector<1x384xf32>
    %177 = vector.broadcast %175 : vector<8x1xf32> to vector<8x384xf32>
    %178 = vector.broadcast %176 : vector<1x384xf32> to vector<8x384xf32>
    %179 = arith.mulf %177, %178 : vector<8x384xf32>
    %180 = arith.addf %174, %179 : vector<8x384xf32>
    %181 = vector.extract_strided_slice %143 {offsets = [0, 6], sizes = [8, 1], strides = [1, 1]} : vector<8x8xf32> to vector<8x1xf32>
    %182 = vector.extract_strided_slice %142 {offsets = [6, 0], sizes = [1, 384], strides = [1, 1]} : vector<8x384xf32> to vector<1x384xf32>
    %183 = vector.broadcast %181 : vector<8x1xf32> to vector<8x384xf32>
    %184 = vector.broadcast %182 : vector<1x384xf32> to vector<8x384xf32>
    %185 = arith.mulf %183, %184 : vector<8x384xf32>
    %186 = arith.addf %180, %185 : vector<8x384xf32>
    %187 = vector.extract_strided_slice %143 {offsets = [0, 7], sizes = [8, 1], strides = [1, 1]} : vector<8x8xf32> to vector<8x1xf32>
    %188 = vector.extract_strided_slice %142 {offsets = [7, 0], sizes = [1, 384], strides = [1, 1]} : vector<8x384xf32> to vector<1x384xf32>
    %189 = vector.broadcast %187 : vector<8x1xf32> to vector<8x384xf32>
    %190 = vector.broadcast %188 : vector<1x384xf32> to vector<8x384xf32>
    %191 = arith.mulf %189, %190 : vector<8x384xf32>
    %192 = arith.addf %186, %191 : vector<8x384xf32>
    %c0_16 = arith.constant 0 : index
    %c0_17 = arith.constant 0 : index
    %193 = vector.load %arg7[%c0_16, %c0_17] : memref<8x1xf32, #tpu.memory_space<vmem>>, vector<8x1xf32>
    %194 = vector.broadcast %193 : vector<8x1xf32> to vector<8x384xf32>
    %195 = arith.addf %192, %194 : vector<8x384xf32>
    %c0_18 = arith.constant 0 : index
    %c0_19 = arith.constant 0 : index
    %c0_20 = arith.constant 0 : index
    %c0_21 = arith.constant 0 : index
    %196 = vector.load %arg8[%c0_18, %c0_19, %c0_20, %c0_21] : memref<1x1x8x384xf32, #tpu.memory_space<vmem>>, vector<1x1x8x384xf32>
    %197 = vector.shape_cast %196 : vector<1x1x8x384xf32> to vector<8x384xf32>
    %198 = vector.shape_cast %195 : vector<8x384xf32> to vector<1x1x8x384xf32>
    tpu.vector_store %arg8[%c0_18, %c0_19, %c0_20, %c0_21], %198 {strides = array<i32>} : memref<1x1x8x384xf32, #tpu.memory_space<vmem>>, vector<1x1x8x384xf32>,
    return
  }
  func.func @transform_0(%arg0: i32, %arg1: i32) -> (i32, i32, i32, i32) {
    %c0_i32 = arith.constant 0 : i32
    %0 = arith.addi %arg1, %c0_i32 : i32
    %c0_i32_0 = arith.constant 0 : i32
    %c0_i32_1 = arith.constant 0 : i32
    %c0_i32_2 = arith.constant 0 : i32
    return %arg0, %0, %c0_i32_0, %c0_i32_1 : i32, i32, i32, i32
  }
  func.func @transform_1(%arg0: i32, %arg1: i32) -> (i32, i32, i32, i32) {
    %c1_i32 = arith.constant 1 : i32
    %0 = arith.addi %arg1, %c1_i32 : i32
    %c0_i32 = arith.constant 0 : i32
    %c0_i32_0 = arith.constant 0 : i32
    %c0_i32_1 = arith.constant 0 : i32
    return %arg0, %0, %c0_i32, %c0_i32_0 : i32, i32, i32, i32
  }
  func.func @transform_2(%arg0: i32, %arg1: i32) -> (i32, i32, i32, i32) {
    %c2_i32 = arith.constant 2 : i32
    %0 = arith.addi %arg1, %c2_i32 : i32
    %c0_i32 = arith.constant 0 : i32
    %c0_i32_0 = arith.constant 0 : i32
    %c0_i32_1 = arith.constant 0 : i32
    return %arg0, %0, %c0_i32, %c0_i32_0 : i32, i32, i32, i32
  }
  func.func @transform_3(%arg0: i32, %arg1: i32) -> (i32, i32) {
    %c0_i32 = arith.constant 0 : i32
    %c0_i32_0 = arith.constant 0 : i32
    %c0_i32_1 = arith.constant 0 : i32
    return %c0_i32, %c0_i32_0 : i32, i32
  }
  func.func @transform_4(%arg0: i32, %arg1: i32) -> (i32, i32) {
    %c0_i32 = arith.constant 0 : i32
    %c0_i32_0 = arith.constant 0 : i32
    %c0_i32_1 = arith.constant 0 : i32
    return %c0_i32, %c0_i32_0 : i32, i32
  }
  func.func @transform_5(%arg0: i32, %arg1: i32) -> (i32, i32) {
    %c0_i32 = arith.constant 0 : i32
    %c0_i32_0 = arith.constant 0 : i32
    %c0_i32_1 = arith.constant 0 : i32
    return %c0_i32, %c0_i32_0 : i32, i32
  }
  func.func @transform_6(%arg0: i32, %arg1: i32) -> (i32, i32, i32, i32) {
    %c0_i32 = arith.constant 0 : i32
    %c0_i32_0 = arith.constant 0 : i32
    %c0_i32_1 = arith.constant 0 : i32
    return %arg0, %arg1, %c0_i32, %c0_i32_0 : i32, i32, i32, i32
  }
}

</mosaic_0001>

<bundles_post_ra>
// kernel: tpu_custom_call.1
= control target key start
LH: loop header
LB: loop body
LE: loop exit
PB: predicated region body
PF: predicated region fallthrough
CT: control target
= control target key end

     0   :  { %s2901_s0 = inlined_call_operand.hbm [shape: f32[2,10,8,512], index: 0, kind: input, shape index: {}]   ;;  %s2902_s1 = inlined_call_operand.hbm [shape: f32[2,10,8,512], index: 1, kind: input, shape index: {}]   ;;  %s2903_s2 = inlined_call_operand.hbm [shape: f32[2,10,8,512], index: 2, kind: input, shape index: {}]   ;;  %s2904_s3 = inlined_call_operand.vmem [shape: f32[8,27], index: 3, kind: input, shape index: {}]   ;;  %s2905_s4 = inlined_call_operand.vmem [shape: f32[8,8], index: 4, kind: input, shape index: {}]   ;;  %s2906_s5 = inlined_call_operand.vmem [shape: f32[8,1], index: 5, kind: input, shape index: {}]   ;;  %s2907_s6 = inlined_call_operand.hbm [shape: f32[2,8,8,384], index: 6, kind: output, shape index: {}]  }
   0x1   :  { %2922 = sst [smem:[#allocation21_spill]] %s2902_s1 }
   0x2   :  { %2923 = sst [smem:[#allocation22_spill]] %s2904_s3 }
   0x3   :  { %2924 = sst [smem:[#allocation23_spill]] %s2905_s4 }
   0x4   :  { %2925 = sst [smem:[#allocation24_spill]] %s2906_s5 }
   0x5   :  { %2926 = sst [smem:[#allocation25_spill]] %s2907_s6 }
   0x6   :  { %11 = vsyncpa [#allocation3], 0 }
   0x7   :  { %13 = vsyncpa [#allocation3 + $0x1], 0 }
   0x8   :  { %14 = vsyncpa [#allocation6], 0 }
   0x9   :  { %16 = vsyncpa [#allocation6 + $0x1], 0 }
   0xa   :  { %17 = vsyncpa [#allocation4], 0 }
   0xb   :  { %19 = vsyncpa [#allocation4 + $0x1], 0  ;;  %s2021_s21 = smov 0   ;;  %s2023_s22 = smov 0  }
   0xc   :  { %s2025_s23 = smov 0   ;;  %s2027_s24 = smov 0  }
   0xd   :  { %s2029_s25 = smov 0   ;;  %s2031_s26 = smov 0  }
   0xe   :  { %s2033_s27 = smov 0   ;;  %s2035_s28 = smov 0  }
   0xf   :  { %s2037_s29 = smov 0   ;;  %s2039_s30 = smov 0  }
  0x10   :  { %s2041_s7 = smov 0   ;;  %s2043_s8 = smov 0  }
  0x11   :  { %s2045_s9 = smov 0   ;;  %s2047_s10 = smov 0  }
  0x12 LB: > { %2927 = sst [smem:[#allocation13_spill]] %s1909_s25  ;;  %s2092_s11 = sadd.s32 4294967295, %s1945_s10   ;;  %s1945_s10 = sphi %s2047_s10, %s25_s10   ;;  %s1941_s9 = sphi %s2045_s9, %s2991_s9   ;;  %s1937_s8 = sphi %s2043_s8, %s2990_s8   ;;  %s1933_s7 = sphi %s2041_s7, %s2989_s7   ;;  %s1929_s30 = sphi %s2039_s30, %s2988_s30   ;;  %s1925_s29 = sphi %s2037_s29, %s2987_s29   ;;  %s1921_s28 = sphi %s2035_s28, %s2986_s28   ;;  %s1917_s27 = sphi %s2033_s27, %s2985_s27   ;;  %s1913_s26 = sphi %s2031_s26, %s2984_s26   ;;  %s1909_s25 = sphi %s2029_s25, %s2983_s25   ;;  %s1905_s24 = sphi %s2027_s24, %s2982_s24   ;;  %s1901_s23 = sphi %s2025_s23, %s2981_s23   ;;  %s1897_s22 = sphi %s2023_s22, %s2980_s22   ;;  %s1893_s21 = sphi %s2021_s21, %s2979_s21  }
  0x13   : > { %2928 = sst [smem:[#allocation14_spill]] %s1929_s30  ;;  %s34_s12 = sadd.s32 1, %s1937_s8 }
  0x14   : > { %2929 = sst [smem:[#allocation15_spill]] %s1933_s7  ;;  %p35_p0 = scmp.ge.s32.totalorder %s34_s12, 8 }
  0x15   : > { %2930 = sst [smem:[#allocation16_spill]] %s1941_s9  ;;  %s37_s13 = sadd.s32 1, %s1941_s9 }
  0x16   : > { %p2916_p1 = scmp.eq.s32.totalorder %s1945_s10, 0  ;;  %p2915_p2 = scmp.eq.s32.totalorder %s2092_s11, 0 }
  0x17   : > { %s2098_s14 = scalar_select %p35_p0, 0, %s34_s12  }
  0x18   : > { %s2993_s13 = smov (!%p35_p0, %s37_s13), %s1941_s9  ;;  %s76_s18 = sadd.s32 1, %s1913_s26 }
  0x19   : > { %2931 = sst [smem:[#allocation17_spill]] %s2098_s14  ;;  %s42_s15 = ssub.s32 %s1937_s8, %s2098_s14 }
  0x1a   : > { %s70_s16 = sadd.s32 1, %s2098_s14  ;;  %p39_p3 = scmp.ge.s32.totalorder %s2993_s13, 2 }
  0x1b   : > { %s72_s17 = ssub.s32 %s34_s12, %s70_s16  ;;  %p83_p4 = scmp.ne.s32.totalorder %s1913_s26, %s1909_s25 }
  0x1c   : > { %s2995_s13 = smov (%p39_p3, %s2993_s13), 0  ;;  %p89_p6 = scmp.ne.s32.totalorder %s1909_s25, %s1905_s24 }
  0x1d   : > { %2932 = sst [smem:[#allocation18_spill]] %s2995_s13  ;;  %p2111_p5 = por %p83_p4, %p2916_p1 }
  0x1e   : > { %s41_s20 = ssub.s32 %s1941_s9, %s2995_s13  ;;  %s99_s6 = sadd.s32 2, %s1937_s8 }
  0x1f   : > { %s2120_s7 = sor.u32 %s42_s15, %s41_s20  ;;  %s73_s12 = sor.u32 %s72_s17, %s41_s20 }
  0x20   : > { %p74_p8 = scmp.eq.s32.totalorder %s73_s12, 0  ;;  %p2125_p9 = por %p89_p6, %p2915_p2 }
  0x21   : > { %s100_s30 = sadd.s32 2, %s2098_s14  ;;  %p2914_p10 = scmp.lt.s32.totalorder %s1945_s10, 16 }
  0x22   : > { %s2934_s16 = scalar_select %p2125_p9, 1, 0 }
  0x23   : > { %s2131_s5 = scalar_select %p74_p8, %s1913_s26, %s76_s18  }
  0x24   : > { %2935 = sst [smem:[#allocation19_spill]] %s2934_s16  ;;  %s102_s4 = ssub.s32 %s99_s6, %s100_s30 }
  0x25   : > { %2936 = sst [smem:[#allocation20_spill]] %s2131_s5  ;;  %s103_s24 = sor.u32 %s102_s4, %s41_s20 }
  0x26   : > { %p2134_p11 = scmp.eq.s32.totalorder %s103_s24, 0  ;;  %s1473_s17 = sshll.u32 %s1937_s8, 2 }
  0x27   : > { %s1488_s12 = smul.u32 40, %s1941_s9  ;;  %s264_s13 = sand.u32 1, %s1945_s10  }
  0x28   : > { %s266_s3 = sand.u32 1, %s1913_s26   ;;  %s2938_s1 = sld [smem:[#allocation21_spill]] }
  0x29   : > { %s253_s25 = sadd.s32 %s1488_s12, %s1473_s17  ;;  %s1475_s16 = sshll.u32 %s266_s3, 5 }
  0x2a   : > { %s2142_s14 = sshll.u32 %s253_s25, 7  ;;  %s268_s18 = scalar_lea.vmem [#allocation5], %s1475_s16 }
  0x2b   : > { %s279_s20 = sshll.u32 %s268_s18, 4  ;;  %p2156_p12 = pnand %p2914_p10, %p2111_p5  ;;  %s2150_s20 = int_to_ptr.vmem [resolvable:$true] %s279_s20 }
  0x2c   : > { %s2162_s25 = scalar_lea.sflag [#allocation6], %s264_s13 }
  0x2d   : > { %p1701_p4 = pneg %p2156_p12 }
  0x2e   : > { %s1372_s4 = scalar_lea.hbm %s2938_s1, %s2142_s14  ;;  %s1704_s17 = scalar_lea.hbm %s2938_s1, 10240 }
  0x2f   : > { %s2148_s5 = scalar_lea.hbm %s1372_s4, 512  ;;  %s1729_s16 = scalar_lea.hbm %s1372_s4, 1024 }
  0x30   : > { %p1700_p3 = scmp.ne.s32.totalorder %s2148_s5, %s1729_s16  ;;  %p1705_p5 = scmp.lt.u32.totalorder %s2148_s5, %s2938_s1 }
  0x31   : > { %p1706_p10 = scmp.lt.u32.totalorder %s1704_s17, %s1729_s16  ;;  %p1708_p1 = scmp.lt.u32.totalorder %s1729_s16, %s2148_s5 }
  0x32   : > { %p1702_p6 = pnand %p1701_p4, %p1700_p3 }
  0x33   : > { %p1707_p2 = por %p1706_p10, %p1705_p5 }
  0x34   : > { %p1703_p8 = pneg %p1702_p6 }
  0x35   : > { %p1709_p7 = por %p1708_p1, %p1707_p2 }
  0x37   : > { %p1710_p13 = pnand %p1709_p7, %p1703_p8 }
  0x39   : > { %1713 = shalt.err (!%p1710_p13)
}
  0x3a   : > { %s1714_s13 = scalar_lea.vmem %s2150_s20, 512  ;;  %s1947_s30 = smov [#allocation5]  }
  0x3b   : > { %p1715_p3 = scmp.ne.s32.totalorder %s2150_s20, %s1714_s13  ;;  %s1719_s4 = sshll.u32 %s1947_s30, 4  ;;  %s1720_s4 = int_to_ptr.vmem [resolvable:$false] %s1719_s4 }
  0x3c   : > { %s1721_s18 = scalar_lea.vmem %s1720_s4, 1024  ;;  %p1722_p9 = scmp.lt.s32.totalorder %s2150_s20, %s1720_s4 }
  0x3d   : > { %p1717_p6 = pnand %p1715_p3, %p1701_p4  ;;  %p1723_p10 = scmp.lt.s32.totalorder %s1721_s18, %s1714_s13 }
  0x3f   : > { %p1718_p0 = pneg %p1717_p6  ;;  %p1724_p5 = por %p1723_p10, %p1722_p9 }
  0x41   : > { %p1725_p1 = pnand %p1724_p5, %p1718_p0 }
  0x43   : > { %1728 = shalt.err (!%p1725_p1)
}
  0x44   : > { %1506 = dma.hbm_to_vmem [thread:$0]  (!%p2156_p12), %s2148_s5, 512, %s2150_s20, %s2162_s25  }
  0x45   : > { %p2940_p2 = scmp.lt.s32.totalorder %s1945_s10, 17  ;;  %p2941_p7 = scmp.ge.s32.totalorder %s1945_s10, 1 }
  0x46   : > { %s1469_s16 = sadd.s32 4294967294, %s1945_s10   ;;  %s46_s19 = sadd.s32 1, %s1925_s29 }
  0x47   : > { %p2193_p9 = pnand %p2941_p7, %p2940_p2  ;;  %p53_p13 = scmp.ne.s32.totalorder %s1925_s29, %s1921_s28 }
  0x48   : > { %p2943_p0 = scmp.eq.s32.totalorder %s2120_s7, 0  ;;  %p2944_p4 = scmp.eq.s32.totalorder %s1945_s10, 0 }
  0x49   : > { %s2942_s3 = scalar_select %p2193_p9, 1, 0 }
  0x4a   : > { %s2204_s24 = scalar_select %p2943_p0, %s1925_s29, %s46_s19  }
  0x4b   : > { %p55_p8 = por %p2944_p4, %p53_p13  ;;  %p59_p3 = scmp.ne.s32.totalorder %s1921_s28, %s1917_s27 }
  0x4c   : > { %p208_p6 = scmp.eq.s32.totalorder %s2092_s11, 15  ;;  %p214_p10 = scmp.eq.s32.totalorder %s1469_s16, 15 }
  0x4d   : > { %p2945_p5 = scmp.eq.s32.totalorder %s2092_s11, 0  ;;  %s243_s20 = sand.u32 1, %s1925_s29  }
  0x4e   : > { %p2218_p1 = por %p208_p6, %p53_p13  ;;  %p2222_p2 = por %p214_p10, %p59_p3 }
  0x4f   : > { %p2213_p12 = por %p2945_p5, %p59_p3  ;;  %s1472_s7 = sshll.u32 %s243_s20, 5 }
  0x50   : > { %s2947_s17 = scalar_select %p2218_p1, 1, 0 }
  0x51   : > { %s2946_s5 = scalar_select %p2213_p12, 1, 0 }
  0x52   : > { %s2948_s12 = scalar_select %p2222_p2, 1, 0 }
  0x53   : > { %s2230_s30 = scalar_lea.hbm %s2901_s0, %s2142_s14  ;;  %s247_s4 = scalar_lea.vmem [#allocation2], %s1472_s7 }
  0x54   : > { %s257_s18 = sshll.u32 %s247_s4, 4  ;;  %p2949_p7 = scmp.lt.s32.totalorder %s1945_s10, 16  ;;  %s2238_s18 = int_to_ptr.vmem [resolvable:$true] %s257_s18 }
  0x55   : > { %s244_s19 = scalar_lea.sflag [#allocation3], %s243_s20  ;;  %s1730_s1 = scalar_lea.hbm %s2230_s30, 512 }
  0x56   : > { %p2234_p13 = pnand %p2949_p7, %p55_p8  ;;  %p1731_p0 = scmp.ne.s32.totalorder %s2230_s30, %s1730_s1 }
  0x57   : > { %s1735_s13 = scalar_lea.hbm %s2901_s0, 10240  ;;  %p1736_p8 = scmp.lt.u32.totalorder %s2230_s30, %s2901_s0 }
  0x58   : > { %p1732_p4 = pneg %p2234_p13  ;;  %p1737_p10 = scmp.lt.u32.totalorder %s1735_s13, %s1730_s1 }
  0x59   : > { %p1739_p7 = scmp.lt.u32.totalorder %s1730_s1, %s2230_s30 }
  0x5a   : > { %p1733_p3 = pnand %p1732_p4, %p1731_p0  ;;  %p1738_p5 = por %p1737_p10, %p1736_p8 }
  0x5c   : > { %p1734_p6 = pneg %p1733_p3  ;;  %p1740_p2 = por %p1739_p7, %p1738_p5 }
  0x5e   : > { %p1741_p1 = pnand %p1740_p2, %p1734_p6 }
  0x60   : > { %1744 = shalt.err (!%p1741_p1)
}
  0x61   : > { %s1745_s20 = scalar_lea.vmem %s2238_s18, 512  ;;  %s1948_s7 = smov [#allocation2]  }
  0x62   : > { %p1746_p0 = scmp.ne.s32.totalorder %s2238_s18, %s1745_s20  ;;  %s1750_s6 = sshll.u32 %s1948_s7, 4  ;;  %s1751_s6 = int_to_ptr.vmem [resolvable:$false] %s1750_s6 }
  0x63   : > { %s1752_s9 = scalar_lea.vmem %s1751_s6, 1024  ;;  %p1753_p9 = scmp.lt.s32.totalorder %s2238_s18, %s1751_s6 }
  0x64   : > { %p1748_p3 = pnand %p1746_p0, %p1732_p4  ;;  %p1754_p8 = scmp.lt.s32.totalorder %s1752_s9, %s1745_s20 }
  0x66   : > { %p1749_p12 = pneg %p1748_p3  ;;  %p1755_p10 = por %p1754_p8, %p1753_p9 }
  0x68   : > { %p1756_p5 = pnand %p1755_p10, %p1749_p12 }
  0x6a   : > { %1759 = shalt.err (!%p1756_p5)
}
  0x6b   : > { %1503 = dma.hbm_to_vmem [thread:$0]  (!%p2234_p13), %s2230_s30, 512, %s2238_s18, %s244_s19  }
  0x6c   : > { %s106_s1 = sadd.s32 1, %s1901_s23  ;;  %p113_p9 = scmp.ne.s32.totalorder %s1901_s23, %s1897_s22 }
  0x6d   : > { %s2271_s13 = scalar_select %p2134_p11, %s1901_s23, %s106_s1  }
  0x6e   : > { %p2951_p12 = scmp.eq.s32.totalorder %s1945_s10, 0  ;;  %p119_p2 = scmp.ne.s32.totalorder %s1897_s22, %s1893_s21 }
  0x6f   : > { %s288_s16 = sand.u32 1, %s1901_s23   ;;  %s1381_s7 = scalar_lea.hbm %s2903_s2, %s2142_s14 }
  0x70   : > { %p115_p1 = por %p113_p9, %p2951_p12  ;;  %p2952_p4 = scmp.eq.s32.totalorder %s2092_s11, 0 }
  0x71   : > { %s1478_s9 = sshll.u32 %s288_s16, 5  ;;  %s2288_s30 = scalar_lea.hbm %s1381_s7, 1024 }
  0x72   : > { %p2284_p6 = por %p119_p2, %p2952_p4  ;;  %s290_s15 = scalar_lea.vmem [#allocation7], %s1478_s9 }
  0x73   : > { %s301_s18 = sshll.u32 %s290_s15, 4  ;;  %p2954_p11 = scmp.lt.s32.totalorder %s1945_s10, 16  ;;  %s302_s18 = int_to_ptr.vmem [resolvable:$true] %s301_s18 }
  0x74   : > { %s2953_s6 = scalar_select %p2284_p6, 1, 0 }
  0x75   : > { %p2292_p13 = pnand %p2954_p11, %p115_p1  ;;  %s1790_s14 = scalar_lea.hbm %s1381_s7, 1536 }
  0x76   : > { %p1761_p7 = scmp.ne.s32.totalorder %s2288_s30, %s1790_s14  ;;  %s1765_s16 = scalar_lea.hbm %s2903_s2, 10240 }
  0x77   : > { %p1762_p0 = pneg %p2292_p13  ;;  %p1766_p10 = scmp.lt.u32.totalorder %s2288_s30, %s2903_s2 }
  0x78   : > { %p1767_p5 = scmp.lt.u32.totalorder %s1765_s16, %s1790_s14  ;;  %p1769_p12 = scmp.lt.u32.totalorder %s1790_s14, %s2288_s30 }
  0x79   : > { %p1763_p3 = pnand %p1762_p0, %p1761_p7 }
  0x7a   : > { %p1768_p9 = por %p1767_p5, %p1766_p10 }
  0x7b   : > { %p1764_p8 = pneg %p1763_p3 }
  0x7c   : > { %p1770_p1 = por %p1769_p12, %p1768_p9 }
  0x7e   : > { %p1771_p2 = pnand %p1770_p1, %p1764_p8 }
  0x80   : > { %1774 = shalt.err (!%p1771_p2)
}
  0x81   : > { %s1775_s7 = scalar_lea.vmem %s302_s18, 512  ;;  %s1949_s9 = smov [#allocation7]  }
  0x82   : > { %p1776_p4 = scmp.ne.s32.totalorder %s302_s18, %s1775_s7  ;;  %s1780_s15 = sshll.u32 %s1949_s9, 4  ;;  %s1781_s15 = int_to_ptr.vmem [resolvable:$false] %s1780_s15 }
  0x83   : > { %s1782_s19 = scalar_lea.vmem %s1781_s15, 1024  ;;  %p1783_p3 = scmp.lt.s32.totalorder %s302_s18, %s1781_s15 }
  0x84   : > { %p1778_p11 = pnand %p1776_p4, %p1762_p0  ;;  %p1784_p6 = scmp.lt.s32.totalorder %s1782_s19, %s1775_s7 }
  0x86   : > { %p1779_p7 = pneg %p1778_p11  ;;  %p1785_p5 = por %p1784_p6, %p1783_p3 }
  0x88   : > { %p1786_p10 = pnand %p1785_p5, %p1779_p7 }
  0x8a   : > { %1789 = shalt.err (!%p1786_p10)
}
  0x8b   : > { %1509 = dma.hbm_to_vmem [thread:$0]  (!%p2292_p13), %s2288_s30, 512, %s302_s18, %s2162_s25  }
  0x8c   : > { %p2956_p8 = scmp.ne.s32.totalorder %s2942_s3, 0 }
  0x8d   : > { %s2320_s14 = sand.u32 (!%p2956_p8), 1, %s1921_s28   ;;  %p2957_p6 = scmp.ne.s32.totalorder (!%p2956_p8), %s2946_s5, 0 }
  0x8e   : > { %310 = sbr.rel (%p2956_p8) target bundleno = 894 (0x37e), region = 44  ;;  %s1482_s1 = sshll.u32 (!%p2956_p8), %s2320_s14, 5 }
  0x8f   : > { %s313_s16 = scalar_lea.sflag (!%p2956_p8), [#allocation3], %s2320_s14  ;;  %s2324_s4 = scalar_lea.vmem (!%p2956_p8), [#allocation2], %s1482_s1 }
  0x95   : > { %1876 = dma.done.wait (%p2957_p6), %s313_s16, 512  }
  0x96   : > { %1878 = vsyncadd (%p2957_p6), %s313_s16, 4294966784  ;;  %s2958_s25 = sld [smem:[#allocation13_spill]]  ;;  %s2959_s30 = sld [smem:[#allocation19_spill]] }
  0x97   : > { %s321_s3 = sand.u32 1, %s2092_s11  }
  0x98   : > { %s322_s20 = scalar_lea.sflag [#allocation6], %s321_s3 }
  0x9c   : > { %s323_s18 = sand.u32 1, %s2958_s25   ;;  %p2960_p13 = scmp.ne.s32.totalorder %s2959_s30, 0 }
  0x9d   : > { %s1483_s21 = sshll.u32 %s323_s18, 5 }
  0x9e   : > { %s2332_s7 = scalar_lea.vmem [#allocation5], %s1483_s21 }
  0x9f   : > { %1880 = dma.done.wait (%p2960_p13), %s322_s20, 512  }
  0xa0   : > { %1882 = vsyncadd (%p2960_p13), %s322_s20, 4294966784  ;;  %s332_s9 = sand.u32 1, %s1897_s22   ;;  %p2961_p0 = scmp.ne.s32.totalorder %s2953_s6, 0 }
  0xa1   : > { %s1484_s15 = sshll.u32 %s332_s9, 5 }
  0xa2   : > { %s2339_s5 = scalar_lea.vmem [#allocation7], %s1484_s15 }
  0xa3   : > { %1884 = dma.done.wait (%p2961_p0), %s322_s20, 512  }
  0xa4   : > { %1886 = vsyncadd (%p2961_p0), %s322_s20, 4294966784  ;;  %v1950_v0 = vmov 0   ;;  %v1951_v1 = vmov 2   ;;  %s2962_s1 = sld [smem:[#allocation22_spill]]  ;;  %v1952_v3 = vmov 1   ;;  %v1953_v4 = vmov 10  }
  0xa5   : > { %1663 = vset.pattern.permute.xlu0 %v1950_v0  ;;  %1665 = vset.pattern.permute.xlu1 %v1951_v1  ;;  %v1954_v5 = vmov 3   ;;  %v1955_v6 = vmov 11   ;;  %v1956_v7 = vmov 4   ;;  %v1957_v8 = vmov 5   ;;  %v2375_v17 = vld [vmem:[%s2324_s4 + $0x18] sm:$0xff]  ;;  %v2378_v18 = vld [vmem:[%s2324_s4] sm:$0xff] }
  0xa6   : > { %v1958_v9 = vmov 6   ;;  %v1959_v10 = vmov 7   ;;  %v1960_v11 = vmov 8   ;;  %v1961_v12 = vmov 9   ;;  %s1965_s6 = smov 127   ;;  %v2386_v24 = vld [vmem:[%s2324_s4 + $0x8] sm:$0xff] }
  0xa7   : > { %v1962_v13 = vmov 12   ;;  %v1963_v14 = vmov 13   ;;  %v1964_v15 = vmov 14   ;;  %s1966_s16 = smov 126   ;;  %v2392_v27 = vld [vmem:[%s2324_s4 + $0x10] sm:$0xff]  ;;  %s1967_s25 = smov 110  }
  0xa8   : > { %s1968_s4 = smov 109   ;;  %s1969_s30 = smov 108   ;;  %v2420_v47 = vld [vmem:[%s2332_s7 + $0x8] sm:$0xff]  ;;  %v2428_v51 = vld [vmem:[%s2332_s7 + $0x18] sm:$0xff]  ;;  %v2437_v56 = vld [vmem:[%s2332_s7] sm:$0xff]  ;;  %vm411_vm0 = vcmask 1039360  }
  0xa9   : > { %s1970_s3 = smov 92   ;;  %s1971_s18 = smov 91   ;;  %v2446_v60 = vld [vmem:[%s2332_s7 + $0x10] sm:$0xff]  ;;  %vm441_vm1 = vcmask 1031168   ;;  %vm471_vm2 = vcmask 900096   ;;  %vm501_vm3 = vcmask 891904  }
  0xaa   : > { %v2350_v2 = vld [vmem:[%s2962_s1] sm:$0xff]  ;;  %s1972_s21 = smov 90   ;;  %vm531_vm4 = vcmask 883712   ;;  %vm561_vm5 = vcmask 752640   ;;  %vm591_vm6 = vcmask 744448   ;;  %vm621_vm7 = vcmask 736256  }
  0xab   : > { %382 = vperm.xlu0 %1663, %v2350_v2   ;;  %422 = vperm.xlu1 %1665, %v2350_v2   ;;  %s2963_s9 = sld [smem:[#allocation23_spill]]  ;;  %s2964_s11 = sld [smem:[#allocation24_spill]] }
  0xac   : > { %s2965_s19 = sld [smem:[#allocation14_spill]]  ;;  %s2966_s1 = sld [smem:[#allocation15_spill]] }
  0xad   : > { %s2967_s7 = sld [smem:[#allocation25_spill]]  ;;  %p2969_p12 = scmp.ne.s32.totalorder %s2947_s17, 0 }
  0xaf   : > { %1664 = vset.pattern.permute.xlu0 %v1952_v3  ;;  %1673 = vset.pattern.permute.xlu1 %v1953_v4 }
  0xb0   : > { %392 = vperm.xlu0 %1664, %v2350_v2   ;;  %646 = vperm.xlu1 %1673, %v2350_v2  }
  0xb3   : > { %s2968_s15 = smov %s2967_s7 }
  0xb4   : > { %1666 = vset.pattern.permute.xlu0 %v1954_v5  ;;  %1674 = vset.pattern.permute.xlu1 %v1955_v6 }
  0xb5   : > { %452 = vperm.xlu0 %1666, %v2350_v2   ;;  %675 = vperm.xlu1 %1674, %v2350_v2  }
  0xb9   : > { %1667 = vset.pattern.permute.xlu0 %v1956_v7 }
  0xba   : > { %482 = vperm.xlu0 %1667, %v2350_v2  }
  0xbe   : > { %1668 = vset.pattern.permute.xlu0 %v1957_v8 }
  0xbf   : > { %512 = vperm.xlu0 %1668, %v2350_v2  }
  0xc3   : > { %1669 = vset.pattern.permute.xlu0 %v1958_v9 }
  0xc4   : > { %542 = vperm.xlu0 %1669, %v2350_v2  }
  0xc8   : > { %1670 = vset.pattern.permute.xlu0 %v1959_v10 }
  0xc9   : > { %572 = vperm.xlu0 %1670, %v2350_v2  }
  0xcd   : > { %1671 = vset.pattern.permute.xlu0 %v1960_v11 }
  0xce   : > { %602 = vperm.xlu0 %1671, %v2350_v2  }
  0xd2   : > { %1672 = vset.pattern.permute.xlu0 %v1961_v12 }
  0xd3   : > { %636 = vperm.xlu0 %1672, %v2350_v2  }
  0xd7   : > { %1675 = vset.pattern.permute.xlu0 %v1962_v13 }
  0xd8   : > { %704 = vperm.xlu0 %1675, %v2350_v2  }
  0xdc   : > { %1676 = vset.pattern.permute.xlu0 %v1963_v14 }
  0xdd   : > { %733 = vperm.xlu0 %1676, %v2350_v2  }
  0xe1   : > { %1677 = vset.pattern.permute.xlu0 %v1964_v15  ;;  %v1973_v15 = vmov 15  }
 0x12a   : > { %v2372_v16 = vpop.permute.xlu0 %382  ;;  %v423_v20 = vpop.permute.xlu1 %422 }
 0x12b   : > { %v425_v23 = vmul.f32 %v423_v20, %v2378_v18  ;;  %v427_v28 = vmul.f32 %v423_v20, %v2392_v27  ;;  %v426_v31 = vmul.f32 %v423_v20, %v2386_v24  ;;  %v428_v34 = vmul.f32 %v423_v20, %v2375_v17 }
 0x12f   : > { %v393_v19 = vpop.permute.xlu0 %392  ;;  %v647_v46 = vpop.permute.xlu1 %646 }
 0x130   : > { %v398_v21 = vmul.f32 %v393_v19, %v2375_v17  ;;  %v395_v22 = vmul.f32 %v393_v19, %v2378_v18  ;;  %v396_v25 = vmul.f32 %v393_v19, %v2386_v24  ;;  %v397_v29 = vmul.f32 %v393_v19, %v2392_v27 }
 0x131   : > { %v650_v49 = vmul.f32 %v647_v46, %v2420_v47  ;;  %v652_v55 = vmul.f32 %v647_v46, %v2428_v51 }
 0x132   : > { %409 = vrot.lane.b32.xlu0 %v398_v21, %s1965_s6  ;;  %403 = vrot.lane.b32.xlu1 %v395_v22, %s1965_s6  ;;  %v1974_v21 = vmov 16  }
 0x133   : > { %1679 = vset.pattern.permute.xlu1 %v1974_v21 }
 0x134   : > { %v453_v26 = vpop.permute.xlu0 %452  ;;  %v676_v52 = vpop.permute.xlu1 %675 }
 0x135   : > { %v457_v32 = vmul.f32 %v453_v26, %v2392_v27  ;;  %v455_v37 = vmul.f32 %v453_v26, %v2378_v18  ;;  %v456_v39 = vmul.f32 %v453_v26, %v2386_v24  ;;  %v458_v43 = vmul.f32 %v453_v26, %v2375_v17 }
 0x136   : > { %433 = vrot.lane.b32.xlu0 %v425_v23, %s1966_s16  ;;  %405 = vrot.lane.b32.xlu1 %v396_v25, %s1965_s6  ;;  %v678_v57 = vmul.f32 %v676_v52, %v2437_v56  ;;  %v680_v62 = vmul.f32 %v676_v52, %v2446_v60 }
 0x139   : > { %v483_v30 = vpop.permute.xlu0 %482 }
 0x13a   : > { %437 = vrot.lane.b32.xlu0 %v427_v28, %s1966_s16  ;;  %407 = vrot.lane.b32.xlu1 %v397_v29, %s1965_s6  ;;  %v487_v35 = vmul.f32 %v483_v30, %v2392_v27  ;;  %v485_v48 = vmul.f32 %v483_v30, %v2378_v18  ;;  %v486_v50 = vmul.f32 %v483_v30, %v2386_v24 }
 0x13b   : > { %v488_v54 = vmul.f32 %v483_v30, %v2375_v17  ;;  %v649_v28 = vmul.f32 %v647_v46, %v2437_v56  ;;  %v651_v29 = vmul.f32 %v647_v46, %v2446_v60  ;;  %v679_v30 = vmul.f32 %v676_v52, %v2420_v47 }
 0x13c   : > { %v385_v46 = vmul.f32 %v2372_v16, %v2378_v18 }
 0x13e   : > { %435 = vrot.lane.b32.xlu1 %v426_v31, %s1966_s16  ;;  %467 = vrot.lane.b32.xlu0 %v457_v32, %s1967_s25  ;;  %v513_v33 = vpop.permute.xlu0 %512  ;;  %v681_v31 = vmul.f32 %v676_v52, %v2428_v51 }
 0x13f   : > { %v517_v38 = vmul.f32 %v513_v33, %v2392_v27  ;;  %v515_v58 = vmul.f32 %v513_v33, %v2378_v18  ;;  %v516_v61 = vmul.f32 %v513_v33, %v2386_v24  ;;  %v518_v6 = vmul.f32 %v513_v33, %v2375_v17 }
 0x142   : > { %439 = vrot.lane.b32.xlu1 %v428_v34, %s1966_s16  ;;  %497 = vrot.lane.b32.xlu0 %v487_v35, %s1968_s4 }
 0x143   : > { %v543_v36 = vpop.permute.xlu0 %542 }
 0x144   : > { %v547_v40 = vmul.f32 %v543_v36, %v2392_v27  ;;  %v545_v12 = vmul.f32 %v543_v36, %v2378_v18  ;;  %v546_v13 = vmul.f32 %v543_v36, %v2386_v24  ;;  %v548_v14 = vmul.f32 %v543_v36, %v2375_v17 }
 0x146   : > { %463 = vrot.lane.b32.xlu1 %v455_v37, %s1967_s25  ;;  %527 = vrot.lane.b32.xlu0 %v517_v38, %s1969_s30 }
 0x148   : > { %v573_v41 = vpop.permute.xlu0 %572 }
 0x149   : > { %v577_v42 = vmul.f32 %v573_v41, %v2392_v27  ;;  %v575_v19 = vmul.f32 %v573_v41, %v2378_v18  ;;  %v576_v20 = vmul.f32 %v573_v41, %v2386_v24  ;;  %v578_v22 = vmul.f32 %v573_v41, %v2375_v17 }
 0x14a   : > { %465 = vrot.lane.b32.xlu1 %v456_v39, %s1967_s25  ;;  %557 = vrot.lane.b32.xlu0 %v547_v40, %s1970_s3  ;;  %v387_v39 = vmul.f32 %v2372_v16, %v2392_v27 }
 0x14d   : > { %v603_v44 = vpop.permute.xlu0 %602 }
 0x14e   : > { %469 = vrot.lane.b32.xlu1 %v458_v43, %s1967_s25  ;;  %587 = vrot.lane.b32.xlu0 %v577_v42, %s1971_s18  ;;  %v607_v45 = vmul.f32 %v603_v44, %v2392_v27  ;;  %v605_v23 = vmul.f32 %v603_v44, %v2378_v18  ;;  %v606_v25 = vmul.f32 %v603_v44, %v2386_v24 }
 0x14f   : > { %v608_v26 = vmul.f32 %v603_v44, %v2375_v17 }
 0x152   : > { %493 = vrot.lane.b32.xlu1 %v485_v48, %s1968_s4  ;;  %617 = vrot.lane.b32.xlu0 %v607_v45, %s1972_s21  ;;  %v2432_v53 = vpop.permute.xlu0 %636  ;;  %v386_v48 = vmul.f32 %v2372_v16, %v2386_v24 }
 0x156   : > { %495 = vrot.lane.b32.xlu1 %v486_v50, %s1968_s4  ;;  %659 = vrot.lane.b32.xlu0 %v650_v49, %s1965_s6 }
 0x157   : > { %v705_v59 = vpop.permute.xlu0 %704 }
 0x158   : > { %v709_v63 = vmul.f32 %v705_v59, %v2446_v60  ;;  %v707_v17 = vmul.f32 %v705_v59, %v2437_v56  ;;  %v708_v32 = vmul.f32 %v705_v59, %v2420_v47  ;;  %v710_v35 = vmul.f32 %v705_v59, %v2428_v51 }
 0x15a   : > { %499 = vrot.lane.b32.xlu1 %v488_v54, %s1968_s4  ;;  %663 = vrot.lane.b32.xlu0 %v652_v55, %s1965_s6 }
 0x15c   : > { %v2453_v4 = vpop.permute.xlu0 %733 }
 0x15d   : > { %v738_v11 = vmul.f32 %v2453_v4, %v2446_v60  ;;  %v736_v38 = vmul.f32 %v2453_v4, %v2437_v56  ;;  %v737_v42 = vmul.f32 %v2453_v4, %v2420_v47  ;;  %v739_v55 = vmul.f32 %v2453_v4, %v2428_v51 }
 0x15e   : > { %523 = vrot.lane.b32.xlu1 %v515_v58, %s1969_s30  ;;  %686 = vrot.lane.b32.xlu0 %v678_v57, %s1966_s16 }
 0x162   : > { %525 = vrot.lane.b32.xlu1 %v516_v61, %s1969_s30  ;;  %690 = vrot.lane.b32.xlu0 %v680_v62, %s1966_s16 }
 0x166   : > { %529 = vrot.lane.b32.xlu1 %v518_v6, %s1969_s30  ;;  %719 = vrot.lane.b32.xlu0 %v709_v63, %s1967_s25 }
 0x16a   : > { %553 = vrot.lane.b32.xlu1 %v545_v12, %s1970_s3  ;;  %748 = vrot.lane.b32.xlu0 %v738_v11, %s1968_s4 }
 0x16e   : > { %555 = vrot.lane.b32.xlu1 %v546_v13, %s1970_s3  ;;  %762 = vperm.xlu0 %1677, %v2350_v2  }
 0x172   : > { %559 = vrot.lane.b32.xlu1 %v548_v14, %s1970_s3  ;;  %1678 = vset.pattern.permute.xlu0 %v1973_v15 }
 0x176   : > { %583 = vrot.lane.b32.xlu1 %v575_v19, %s1971_s18 }
 0x17a   : > { %585 = vrot.lane.b32.xlu1 %v576_v20, %s1971_s18 }
 0x17e   : > { %589 = vrot.lane.b32.xlu1 %v578_v22, %s1971_s18 }
 0x182   : > { %613 = vrot.lane.b32.xlu1 %v605_v23, %s1972_s21 }
 0x186   : > { %615 = vrot.lane.b32.xlu1 %v606_v25, %s1972_s21 }
 0x18a   : > { %619 = vrot.lane.b32.xlu1 %v608_v26, %s1972_s21 }
 0x18e   : > { %657 = vrot.lane.b32.xlu1 %v649_v28, %s1965_s6 }
 0x192   : > { %661 = vrot.lane.b32.xlu1 %v651_v29, %s1965_s6 }
 0x196   : > { %688 = vrot.lane.b32.xlu1 %v679_v30, %s1966_s16 }
 0x19a   : > { %692 = vrot.lane.b32.xlu1 %v681_v31, %s1966_s16 }
 0x19e   : > { %715 = vrot.lane.b32.xlu1 %v707_v17, %s1967_s25 }
 0x1a2   : > { %717 = vrot.lane.b32.xlu1 %v708_v32, %s1967_s25 }
 0x1a4   : > { %v404_v33 = vpop.permute.xlu1 %403  ;;  %v410_v34 = vpop.permute.xlu0 %409 }
 0x1a6   : > { %721 = vrot.lane.b32.xlu1 %v710_v35, %s1967_s25 }
 0x1a8   : > { %v406_v36 = vpop.permute.xlu1 %405  ;;  %v434_v37 = vpop.permute.xlu0 %433 }
 0x1a9   : > { %v412_v43 = vsel %vm411_vm0, %v404_v33, %v406_v36 }
 0x1aa   : > { %744 = vrot.lane.b32.xlu1 %v736_v38, %s1968_s4  ;;  %v418_v27 = vadd.f32 %v412_v43, %v385_v46 }
 0x1ac   : > { %v408_v40 = vpop.permute.xlu1 %407  ;;  %v438_v41 = vpop.permute.xlu0 %437 }
 0x1ad   : > { %v413_v44 = vsel %vm411_vm0, %v406_v36, %v408_v40  ;;  %v414_v45 = vsel %vm411_vm0, %v408_v40, %v410_v34 }
 0x1ae   : > { %v420_v49 = vadd.f32 %v414_v45, %v387_v39  ;;  %746 = vrot.lane.b32.xlu1 %v737_v42, %s1968_s4  ;;  %v419_v50 = vadd.f32 %v413_v44, %v386_v48 }
 0x1b0   : > { %v436_v52 = vpop.permute.xlu1 %435  ;;  %v468_v54 = vpop.permute.xlu0 %467 }
 0x1b1   : > { %v442_v57 = vsel %vm441_vm1, %v434_v37, %v436_v52  ;;  %v443_v58 = vsel %vm441_vm1, %v436_v52, %v438_v41 }
 0x1b2   : > { %v448_v59 = vadd.f32 %v442_v57, %v418_v27  ;;  %v449_v18 = vadd.f32 %v443_v58, %v419_v50  ;;  %750 = vrot.lane.b32.xlu1 %v739_v55, %s1968_s4 }
 0x1b4   : > { %v440_v16 = vpop.permute.xlu1 %439  ;;  %v498_v24 = vpop.permute.xlu0 %497 }
 0x1b5   : > { %v444_v61 = vsel %vm441_vm1, %v438_v41, %v440_v16 }
 0x1b6   : > { %v450_v62 = vadd.f32 %v444_v61, %v420_v49 }
 0x1b8   : > { %v464_v63 = vpop.permute.xlu1 %463  ;;  %v528_v6 = vpop.permute.xlu0 %527 }
 0x1bc   : > { %v466_v11 = vpop.permute.xlu1 %465  ;;  %v558_v12 = vpop.permute.xlu0 %557 }
 0x1bd   : > { %v473_v4 = vsel %vm471_vm2, %v466_v11, %v468_v54 }
 0x1be   : > { %v479_v13 = vadd.f32 %v473_v4, %v449_v18 }
 0x1c0   : > { %v470_v14 = vpop.permute.xlu1 %469  ;;  %v588_v15 = vpop.permute.xlu0 %587 }
 0x1c1   : > { %v474_v19 = vsel %vm471_vm2, %v468_v54, %v470_v14  ;;  %v472_v54 = vsel %vm471_vm2, %v464_v63, %v466_v11 }
 0x1c2   : > { %v480_v20 = vadd.f32 %v474_v19, %v450_v62  ;;  %v478_v61 = vadd.f32 %v472_v54, %v448_v59  ;;  %v1979_v54 = vmov 20  }
 0x1c4   : > { %v494_v21 = vpop.permute.xlu1 %493  ;;  %v2517_v22 = vpop.permute.xlu0 %617 }
 0x1c8   : > { %v496_v23 = vpop.permute.xlu1 %495  ;;  %v2520_v28 = vpop.permute.xlu0 %659 }
 0x1c9   : > { %v503_v25 = vsel %vm501_vm3, %v496_v23, %v498_v24 }
 0x1ca   : > { %v509_v26 = vadd.f32 %v503_v25, %v479_v13  ;;  %v1975_v25 = vmov 19  }
 0x1cc   : > { %v500_v29 = vpop.permute.xlu1 %499  ;;  %v2523_v32 = vpop.permute.xlu0 %663 }
 0x1cd   : > { %v504_v30 = vsel %vm501_vm3, %v498_v24, %v500_v29  ;;  %v502_v24 = vsel %vm501_vm3, %v494_v21, %v496_v23 }
 0x1ce   : > { %v510_v31 = vadd.f32 %v504_v30, %v480_v20  ;;  %v508_v11 = vadd.f32 %v502_v24, %v478_v61 }
 0x1d0   : > { %v524_v17 = vpop.permute.xlu1 %523  ;;  %v2526_v36 = vpop.permute.xlu0 %686 }
 0x1d4   : > { %v526_v33 = vpop.permute.xlu1 %525  ;;  %v2529_v41 = vpop.permute.xlu0 %690 }
 0x1d5   : > { %v533_v34 = vsel %vm531_vm4, %v526_v33, %v528_v6 }
 0x1d6   : > { %v539_v35 = vadd.f32 %v533_v34, %v509_v26  ;;  %v639_v26 = vmul.f32 %v2432_v53, %v2437_v56 }
 0x1d8   : > { %v530_v37 = vpop.permute.xlu1 %529  ;;  %v2532_v45 = vpop.permute.xlu0 %719 }
 0x1d9   : > { %v534_v38 = vsel %vm531_vm4, %v528_v6, %v530_v37  ;;  %v532_v6 = vsel %vm531_vm4, %v524_v17, %v526_v33 }
 0x1da   : > { %v540_v39 = vadd.f32 %v534_v38, %v510_v31  ;;  %v538_v14 = vadd.f32 %v532_v6, %v508_v11  ;;  %v640_v31 = vmul.f32 %v2432_v53, %v2420_v47  ;;  %v1982_v11 = vmov 23  }
 0x1dc   : > { %v554_v40 = vpop.permute.xlu1 %553  ;;  %v2535_v50 = vpop.permute.xlu0 %748 }
 0x1e0   : > { %v556_v42 = vpop.permute.xlu1 %555 }
 0x1e1   : > { %v563_v43 = vsel %vm561_vm5, %v556_v42, %v558_v12  ;;  %v562_v13 = vsel %vm561_vm5, %v554_v40, %v556_v42  ;;  %v641_v40 = vmul.f32 %v2432_v53, %v2446_v60 }
 0x1e2   : > { %v569_v44 = vadd.f32 %v563_v43, %v539_v35  ;;  %v568_v20 = vadd.f32 %v562_v13, %v538_v14 }
 0x1e4   : > { %v560_v46 = vpop.permute.xlu1 %559 }
 0x1e5   : > { %v564_v48 = vsel %vm561_vm5, %v558_v12, %v560_v46 }
 0x1e6   : > { %v570_v49 = vadd.f32 %v564_v48, %v540_v39  ;;  %v1976_v39 = vmov 22  }
 0x1e8   : > { %v584_v27 = vpop.permute.xlu1 %583 }
 0x1ec   : > { %v586_v52 = vpop.permute.xlu1 %585 }
 0x1ed   : > { %v593_v55 = vsel %vm591_vm6, %v586_v52, %v588_v15  ;;  %v763_v57 = vpop.permute.xlu0 %762  ;;  %v592_v59 = vsel %vm591_vm6, %v584_v27, %v586_v52  ;;  %v1978_v27 = vmov 25  }
 0x1ee   : > { %v599_v58 = vadd.f32 %v593_v55, %v569_v44  ;;  %v767_v18 = vmul.f32 %v763_v57, %v2446_v60  ;;  %v765_v16 = vmul.f32 %v763_v57, %v2437_v56  ;;  %v766_v4 = vmul.f32 %v763_v57, %v2420_v47 }
 0x1ef   : > { %v768_v21 = vmul.f32 %v763_v57, %v2428_v51  ;;  %v598_v23 = vadd.f32 %v592_v59, %v568_v20  ;;  %v1977_v44 = vmov 17  }
 0x1f0   : > { %v590_v62 = vpop.permute.xlu1 %589  ;;  %777 = vrot.lane.b32.xlu0 %v767_v18, %s1969_s30  ;;  %773 = vrot.lane.b32.xlu1 %v765_v16, %s1969_s30 }
 0x1f1   : > { %v594_v63 = vsel %vm591_vm6, %v588_v15, %v590_v62  ;;  %v1981_v62 = vmov 21  }
 0x1f2   : > { %v600_v12 = vadd.f32 %v594_v63, %v570_v49 }
 0x1f4   : > { %v614_v19 = vpop.permute.xlu1 %613  ;;  %791 = vperm.xlu0 %1678, %v2350_v2   ;;  %775 = vrot.lane.b32.xlu1 %v766_v4, %s1969_s30  ;;  %v1983_v4 = vmov 24  }
 0x1f8   : > { %v616_v15 = vpop.permute.xlu1 %615  ;;  %779 = vrot.lane.b32.xlu1 %v768_v21, %s1969_s30  ;;  %1681 = vset.pattern.permute.xlu0 %v1975_v25  ;;  %v1984_v21 = vmov 26  }
 0x1f9   : > { %v622_v29 = vsel %vm621_vm7, %v614_v19, %v616_v15  ;;  %v623_v30 = vsel %vm621_vm7, %v616_v15, %v2517_v22  ;;  %892 = vperm.xlu0 %1681, %v2350_v2  }
 0x1fa   : > { %v628_v17 = vadd.f32 %v622_v29, %v598_v23  ;;  %v629_v33 = vadd.f32 %v623_v30, %v599_v58  ;;  %v1980_v58 = vmov 18  }
 0x1fc   : > { %v620_v34 = vpop.permute.xlu1 %619  ;;  %820 = vperm.xlu1 %1679, %v2350_v2   ;;  %v642_v35 = vadd.f32 %v639_v26, %v628_v17  ;;  %v643_v37 = vadd.f32 %v640_v31, %v629_v33 }
 0x1fd   : > { %v624_v38 = vsel %vm621_vm7, %v2517_v22, %v620_v34  ;;  %1684 = vset.pattern.permute.xlu0 %v1976_v39 }
 0x1fe   : > { %v630_v42 = vadd.f32 %v624_v38, %v600_v12  ;;  %979 = vperm.xlu0 %1684, %v2350_v2  }
 0x200   : > { %v658_v43 = vpop.permute.xlu1 %657  ;;  %1680 = vset.pattern.permute.xlu1 %v1977_v44  ;;  %v644_v46 = vadd.f32 %v641_v40, %v630_v42 }
 0x201   : > { %v665_v48 = vsel %vm411_vm0, %v658_v43, %v2520_v28  ;;  %849 = vperm.xlu1 %1680, %v2350_v2  }
 0x202   : > { %v671_v49 = vadd.f32 %v665_v48, %v642_v35  ;;  %1687 = vset.pattern.permute.xlu0 %v1978_v27 }
 0x203   : > { %1066 = vperm.xlu0 %1687, %v2350_v2  }
 0x204   : > { %v662_v22 = vpop.permute.xlu1 %661 }
 0x205   : > { %v666_v53 = vsel %vm411_vm0, %v2520_v28, %v662_v22  ;;  %v667_v52 = vsel %vm411_vm0, %v662_v22, %v2523_v32  ;;  %1682 = vset.pattern.permute.xlu1 %v1979_v54 }
 0x206   : > { %v672_v55 = vadd.f32 %v666_v53, %v643_v37  ;;  %v673_v57 = vadd.f32 %v667_v52, %v644_v46  ;;  %921 = vperm.xlu1 %1682, %v2350_v2  }
 0x207   : > { %1689 = vset.pattern.permute.xlu0 %v1980_v58 }
 0x208   : > { %v689_v18 = vpop.permute.xlu1 %688 }
 0x209   : > { %v694_v16 = vsel %vm441_vm1, %v2526_v36, %v689_v18  ;;  %v695_v24 = vsel %vm441_vm1, %v689_v18, %v2529_v41 }
 0x20a   : > { %v700_v61 = vadd.f32 %v694_v16, %v671_v49  ;;  %v701_v28 = vadd.f32 %v695_v24, %v672_v55  ;;  %1683 = vset.pattern.permute.xlu1 %v1981_v62 }
 0x20b   : > { %950 = vperm.xlu1 %1683, %v2350_v2  }
 0x20c   : > { %v693_v32 = vpop.permute.xlu1 %692 }
 0x20d   : > { %v696_v6 = vsel %vm441_vm1, %v2529_v41, %v693_v32  ;;  %v2634_v32 = vld [vmem:[%s2339_s5] sm:$0xff] }
 0x20e   : > { %v702_v63 = vadd.f32 %v696_v6, %v673_v57 }
 0x20f   : > { %1685 = vset.pattern.permute.xlu1 %v1982_v11 }
 0x210   : > { %v716_v12 = vpop.permute.xlu1 %715  ;;  %1008 = vperm.xlu1 %1685, %v2350_v2  }
 0x214   : > { %v718_v36 = vpop.permute.xlu1 %717  ;;  %1686 = vset.pattern.permute.xlu1 %v1983_v4 }
 0x215   : > { %v723_v13 = vsel %vm471_vm2, %v716_v12, %v718_v36  ;;  %v724_v14 = vsel %vm471_vm2, %v718_v36, %v2532_v45  ;;  %1037 = vperm.xlu1 %1686, %v2350_v2  }
 0x216   : > { %v729_v19 = vadd.f32 %v723_v13, %v700_v61  ;;  %v730_v59 = vadd.f32 %v724_v14, %v701_v28  ;;  %v2627_v61 = vld [vmem:[%s2339_s5 + $0x8] sm:$0xff] }
 0x218   : > { %v722_v20 = vpop.permute.xlu1 %721 }
 0x219   : > { %v725_v41 = vsel %vm471_vm2, %v2532_v45, %v722_v20  ;;  %1688 = vset.pattern.permute.xlu1 %v1984_v21 }
 0x21a   : > { %v731_v23 = vadd.f32 %v725_v41, %v702_v63  ;;  %1095 = vperm.xlu1 %1688, %v2350_v2  }
 0x21c   : > { %v745_v15 = vpop.permute.xlu1 %744 }
 0x21e   : > { %1690 = vset.pattern.permute.xlu1 %v1950_v0 }
 0x220   : > { %v747_v25 = vpop.permute.xlu1 %746 }
 0x221   : > { %v752_v26 = vsel %vm501_vm3, %v745_v15, %v747_v25  ;;  %v753_v29 = vsel %vm501_vm3, %v747_v25, %v2535_v50 }
 0x222   : > { %v758_v30 = vadd.f32 %v752_v26, %v729_v19  ;;  %v759_v31 = vadd.f32 %v753_v29, %v730_v59 }
 0x224   : > { %v751_v17 = vpop.permute.xlu1 %750 }
 0x225   : > { %v754_v45 = vsel %vm501_vm3, %v2535_v50, %v751_v17 }
 0x226   : > { %v760_v33 = vadd.f32 %v754_v45, %v731_v23 }
 0x262   : > { %v774_v34 = vpop.permute.xlu1 %773  ;;  %v778_v35 = vpop.permute.xlu0 %777 }
 0x266   : > { %v776_v37 = vpop.permute.xlu1 %775 }
 0x267   : > { %v781_v38 = vsel %vm531_vm4, %v774_v34, %v776_v37  ;;  %v782_v39 = vsel %vm531_vm4, %v776_v37, %v778_v35 }
 0x268   : > { %v2599_v40 = vadd.f32 %v781_v38, %v758_v30  ;;  %v2601_v42 = vadd.f32 %v782_v39, %v759_v31 }
 0x26a   : > { %v780_v43 = vpop.permute.xlu1 %779 }
 0x26b   : > { %v783_v44 = vsel %vm531_vm4, %v778_v35, %v780_v43 }
 0x26c   : > { %v2604_v46 = vadd.f32 %v783_v44, %v760_v33  ;;  %v1123_v44 = vld [vmem:[%s2963_s9] sm:$0xff] }
 0x273   : > { %v792_v48 = vpop.permute.xlu0 %791 }
 0x274   : > { %v795_v50 = vmul.f32 %v792_v48, %v2420_v47  ;;  %v794_v49 = vmul.f32 %v792_v48, %v2437_v56  ;;  %v797_v27 = vmul.f32 %v792_v48, %v2428_v51  ;;  %v796_v22 = vmul.f32 %v792_v48, %v2446_v60 }
 0x276   : > { %804 = vrot.lane.b32.xlu0 %v795_v50, %s1970_s3  ;;  %802 = vrot.lane.b32.xlu1 %v794_v49, %s1970_s3 }
 0x278   : > { %v893_v24 = vpop.permute.xlu0 %892 }
 0x279   : > { %v896_v62 = vmul.f32 %v893_v24, %v2627_v61  ;;  %v895_v6 = vmul.f32 %v893_v24, %v2634_v32 }
 0x27a   : > { %808 = vrot.lane.b32.xlu0 %v797_v27, %s1970_s3  ;;  %806 = vrot.lane.b32.xlu1 %v796_v22, %s1970_s3 }
 0x27b   : > { %v821_v53 = vpop.permute.xlu1 %820 }
 0x27c   : > { %v824_v52 = vmul.f32 %v821_v53, %v2420_v47  ;;  %v823_v54 = vmul.f32 %v821_v53, %v2437_v56  ;;  %v825_v55 = vmul.f32 %v821_v53, %v2446_v60  ;;  %v826_v57 = vmul.f32 %v821_v53, %v2428_v51 }
 0x27d   : > { %v980_v59 = vpop.permute.xlu0 %979 }
 0x27e   : > { %833 = vrot.lane.b32.xlu0 %v824_v52, %s1971_s18  ;;  %831 = vrot.lane.b32.xlu1 %v823_v54, %s1971_s18  ;;  %v983_v20 = vmul.f32 %v980_v59, %v2627_v61  ;;  %v982_v21 = vmul.f32 %v980_v59, %v2634_v32  ;;  %v1301_v52 = vld [vmem:[%s2964_s11] sm:$0xff] }
 0x280   : > { %v850_v58 = vpop.permute.xlu1 %849 }
 0x281   : > { %v852_v18 = vmul.f32 %v850_v58, %v2437_v56  ;;  %v853_v16 = vmul.f32 %v850_v58, %v2420_v47  ;;  %v854_v28 = vmul.f32 %v850_v58, %v2446_v60  ;;  %v2637_v56 = vld [vmem:[%s2339_s5 + $0x18] sm:$0xff]  ;;  %v855_v47 = vmul.f32 %v850_v58, %v2428_v51 }
 0x282   : > { %837 = vrot.lane.b32.xlu0 %v826_v57, %s1971_s18  ;;  %835 = vrot.lane.b32.xlu1 %v825_v55, %s1971_s18  ;;  %v898_v60 = vmul.f32 %v893_v24, %v2637_v56  ;;  %v985_v23 = vmul.f32 %v980_v59, %v2637_v56  ;;  %v1067_v35 = vpop.permute.xlu0 %1066 }
 0x283   : > { %v1070_v37 = vmul.f32 %v1067_v35, %v2627_v61  ;;  %v1069_v39 = vmul.f32 %v1067_v35, %v2634_v32  ;;  %v1072_v43 = vmul.f32 %v1067_v35, %v2637_v56 }
 0x285   : > { %v922_v63 = vpop.permute.xlu1 %921 }
 0x286   : > { %862 = vrot.lane.b32.xlu0 %v853_v16, %s1972_s21  ;;  %860 = vrot.lane.b32.xlu1 %v852_v18, %s1972_s21  ;;  %v925_v11 = vmul.f32 %v922_v63, %v2627_v61  ;;  %v924_v12 = vmul.f32 %v922_v63, %v2634_v32  ;;  %v927_v36 = vmul.f32 %v922_v63, %v2637_v56 }
 0x28a   : > { %882 = vperm.xlu0 %1689, %v2350_v2   ;;  %864 = vrot.lane.b32.xlu1 %v854_v28, %s1972_s21  ;;  %v2646_v2 = vld [vmem:[%s2339_s5 + $0x10] sm:$0xff]  ;;  %v951_v4 = vpop.permute.xlu1 %950  ;;  %s1314_s5 = scalar_lea.sflag [#allocation4], %s2320_s14 }
 0x28b   : > { %v897_v51 = vmul.f32 %v893_v24, %v2646_v2  ;;  %v926_v13 = vmul.f32 %v922_v63, %v2646_v2  ;;  %v953_v14 = vmul.f32 %v951_v4, %v2634_v32  ;;  %v956_v19 = vmul.f32 %v951_v4, %v2637_v56 }
 0x28c   : > { %v955_v41 = vmul.f32 %v951_v4, %v2646_v2  ;;  %v984_v26 = vmul.f32 %v980_v59, %v2646_v2  ;;  %v1071_v50 = vmul.f32 %v1067_v35, %v2646_v2 }
 0x28e   : > { %905 = vrot.lane.b32.xlu0 %v896_v62, %s1965_s6  ;;  %866 = vrot.lane.b32.xlu1 %v855_v47, %s1972_s21 }
 0x28f   : > { %1691 = vset.pattern.permute.xlu0 %v1952_v3  ;;  %v954_v3 = vmul.f32 %v951_v4, %v2627_v61  ;;  %v1009_v15 = vpop.permute.xlu1 %1008 }
 0x290   : > { %v1012_v25 = vmul.f32 %v1009_v15, %v2627_v61  ;;  %v1011_v29 = vmul.f32 %v1009_v15, %v2634_v32  ;;  %v1014_v30 = vmul.f32 %v1009_v15, %v2637_v56  ;;  %v1013_v45 = vmul.f32 %v1009_v15, %v2646_v2 }
 0x292   : > { %909 = vrot.lane.b32.xlu0 %v898_v60, %s1965_s6  ;;  %903 = vrot.lane.b32.xlu1 %v895_v6, %s1965_s6 }
 0x294   : > { %v1038_v31 = vpop.permute.xlu1 %1037 }
 0x295   : > { %v1041_v17 = vmul.f32 %v1038_v31, %v2627_v61  ;;  %v1040_v33 = vmul.f32 %v1038_v31, %v2634_v32  ;;  %v1043_v34 = vmul.f32 %v1038_v31, %v2637_v56  ;;  %v1042_v38 = vmul.f32 %v1038_v31, %v2646_v2 }
 0x296   : > { %907 = vrot.lane.b32.xlu1 %v897_v51, %s1965_s6  ;;  %934 = vrot.lane.b32.xlu0 %v925_v11, %s1966_s16  ;;  %s1489_s6 = smul.u32 24, %s2320_s14 }
 0x299   : > { %v1096_v48 = vpop.permute.xlu1 %1095 }
 0x29a   : > { %938 = vrot.lane.b32.xlu0 %v927_v36, %s1966_s16  ;;  %932 = vrot.lane.b32.xlu1 %v924_v12, %s1966_s16  ;;  %v1100_v49 = vmul.f32 %v1096_v48, %v2646_v2  ;;  %v1098_v27 = vmul.f32 %v1096_v48, %v2634_v32  ;;  %v1099_v22 = vmul.f32 %v1096_v48, %v2627_v61 }
 0x29b   : > { %v1101_v53 = vmul.f32 %v1096_v48, %v2637_v56 }
 0x29e   : > { %936 = vrot.lane.b32.xlu1 %v926_v13, %s1966_s16  ;;  %963 = vrot.lane.b32.xlu0 %v954_v3, %s1967_s25  ;;  %s1490_s16 = smul.u32 3, %s2965_s19  ;;  %s1985_s19 = smov [#allocation8]  }
 0x2a2   : > { %967 = vrot.lane.b32.xlu0 %v956_v19, %s1967_s25  ;;  %961 = vrot.lane.b32.xlu1 %v953_v14, %s1967_s25 }
 0x2a6   : > { %992 = vrot.lane.b32.xlu0 %v983_v20, %s1968_s4  ;;  %965 = vrot.lane.b32.xlu1 %v955_v41, %s1967_s25  ;;  %s1491_s25 = smul.u32 24, %s2966_s1  ;;  %s1795_s1 = sshll.u32 %s1985_s19, 4  ;;  %s1796_s1 = int_to_ptr.vmem [resolvable:$false] %s1795_s1 }
 0x2aa   : > { %996 = vrot.lane.b32.xlu0 %v985_v23, %s1968_s4  ;;  %990 = vrot.lane.b32.xlu1 %v982_v21, %s1968_s4 }
 0x2ae   : > { %994 = vrot.lane.b32.xlu1 %v984_v26, %s1968_s4  ;;  %1021 = vrot.lane.b32.xlu0 %v1012_v25, %s1969_s30  ;;  %s1326_s4 = sadd.s32 %s1491_s25, %s1490_s16 }
 0x2b2   : > { %1025 = vrot.lane.b32.xlu0 %v1014_v30, %s1969_s30  ;;  %1019 = vrot.lane.b32.xlu1 %v1011_v29, %s1969_s30 }
 0x2b6   : > { %1023 = vrot.lane.b32.xlu1 %v1013_v45, %s1969_s30  ;;  %1050 = vrot.lane.b32.xlu0 %v1041_v17, %s1970_s3  ;;  %s1485_s30 = sshll.u32 %s1326_s4, 7 }
 0x2b7   : > { %s2823_s9 = scalar_lea.hbm %s2967_s7, %s1485_s30 }
 0x2ba   : > { %1054 = vrot.lane.b32.xlu0 %v1043_v34, %s1970_s3  ;;  %1048 = vrot.lane.b32.xlu1 %v1040_v33, %s1970_s3 }
 0x2be   : > { %1079 = vrot.lane.b32.xlu0 %v1070_v37, %s1971_s18  ;;  %1052 = vrot.lane.b32.xlu1 %v1042_v38, %s1970_s3  ;;  %s372_s3 = scalar_lea.vmem [#allocation8], %s1489_s6  ;;  %s1797_s6 = scalar_lea.vmem %s1796_s1, 768 }
 0x2c2   : > { %1083 = vrot.lane.b32.xlu0 %v1072_v43, %s1971_s18  ;;  %1077 = vrot.lane.b32.xlu1 %v1069_v39, %s1971_s18 }
 0x2c6   : > { %1148 = vperm.xlu0 %1691, %v1123_v44   ;;  %1081 = vrot.lane.b32.xlu1 %v1071_v50, %s1971_s18  ;;  %s1330_s18 = sshll.u32 %s372_s3, 4  ;;  %s2825_s18 = int_to_ptr.vmem [resolvable:$true] %s1330_s18 }
 0x2c7   : > { %s1791_s11 = scalar_lea.vmem %s2825_s18, 384  ;;  %p1798_p4 = scmp.lt.s32.totalorder %s2825_s18, %s1796_s1 }
 0x2c8   : > { %p1792_p9 = scmp.ne.s32.totalorder %s2825_s18, %s1791_s11  ;;  %p1799_p11 = scmp.lt.s32.totalorder %s1797_s6, %s1791_s11 }
 0x2ca   : > { %1126 = vperm.xlu1 %1690, %v1123_v44   ;;  %1110 = vrot.lane.b32.xlu0 %v1100_v49, %s1972_s21  ;;  %p1793_p1 = pnand %p1792_p9, %p2969_p12  ;;  %p1800_p7 = por %p1799_p11, %p1798_p4 }
 0x2cb   : > { %1692 = vset.pattern.permute.xlu0 %v1951_v1 }
 0x2cc   : > { %p1794_p2 = pneg %p1793_p1 }
 0x2ce   : > { %1106 = vrot.lane.b32.xlu1 %v1098_v27, %s1972_s21  ;;  %1170 = vperm.xlu0 %1692, %v1123_v44   ;;  %p1801_p3 = pnand %p1800_p7, %p1794_p2 }
 0x2cf   : > { %1693 = vset.pattern.permute.xlu1 %v1954_v5 }
 0x2d2   : > { %1108 = vrot.lane.b32.xlu1 %v1099_v22, %s1972_s21  ;;  %1695 = vset.pattern.permute.xlu0 %v1957_v8 }
 0x2d3   : > { %1236 = vperm.xlu0 %1695, %v1123_v44  }
 0x2d6   : > { %1112 = vrot.lane.b32.xlu1 %v1101_v53, %s1972_s21 }
 0x2d7   : > { %1698 = vset.pattern.permute.xlu0 %v1950_v0 }
 0x2d8   : > { %1304 = vperm.xlu0 %1698, %v1301_v52  }
 0x2da   : > { %1192 = vperm.xlu1 %1693, %v1123_v44  }
 0x2de   : > { %1694 = vset.pattern.permute.xlu1 %v1956_v7 }
 0x2df   : > { %1214 = vperm.xlu1 %1694, %v1123_v44  }
 0x2e3   : > { %1696 = vset.pattern.permute.xlu1 %v1958_v9 }
 0x2e4   : > { %1258 = vperm.xlu1 %1696, %v1123_v44  }
 0x2e8   : > { %v805_v1 = vpop.permute.xlu0 %804  ;;  %1697 = vset.pattern.permute.xlu1 %v1959_v10  ;;  %v803_v5 = vpop.permute.xlu1 %802 }
 0x2e9   : > { %v810_v8 = vsel %vm561_vm5, %v803_v5, %v805_v1  ;;  %1280 = vperm.xlu1 %1697, %v1123_v44  }
 0x2ea   : > { %v816_v54 = vadd.f32 %v810_v8, %v2599_v40 }
 0x2ec   : > { %v809_v55 = vpop.permute.xlu0 %808  ;;  %v807_v57 = vpop.permute.xlu1 %806 }
 0x2ed   : > { %v811_v0 = vsel %vm561_vm5, %v805_v1, %v807_v57  ;;  %v812_v58 = vsel %vm561_vm5, %v807_v57, %v809_v55 }
 0x2ee   : > { %v817_v7 = vadd.f32 %v811_v0, %v2601_v42  ;;  %v818_v9 = vadd.f32 %v812_v58, %v2604_v46 }
 0x2f0   : > { %v834_v18 = vpop.permute.xlu0 %833  ;;  %v832_v16 = vpop.permute.xlu1 %831 }
 0x2f1   : > { %v839_v10 = vsel %vm591_vm6, %v832_v16, %v834_v18 }
 0x2f2   : > { %v845_v24 = vadd.f32 %v839_v10, %v816_v54 }
 0x2f4   : > { %v838_v28 = vpop.permute.xlu0 %837  ;;  %v836_v62 = vpop.permute.xlu1 %835 }
 0x2f5   : > { %v840_v56 = vsel %vm591_vm6, %v834_v18, %v836_v62  ;;  %v841_v40 = vsel %vm591_vm6, %v836_v62, %v838_v28  ;;  %v1129_v28 = vlaneseq }
 0x2f6   : > { %v846_v47 = vadd.f32 %v840_v56, %v817_v7  ;;  %v847_v6 = vadd.f32 %v841_v40, %v818_v9 }
 0x2f8   : > { %v861_v60 = vpop.permute.xlu1 %860  ;;  %v863_v42 = vpop.permute.xlu0 %862 }
 0x2f9   : > { %v868_v37 = vsel %vm621_vm7, %v861_v60, %v863_v42 }
 0x2fa   : > { %v874_v44 = vadd.f32 %v868_v37, %v845_v24 }
 0x2fc   : > { %v865_v63 = vpop.permute.xlu1 %864 }
 0x2fd   : > { %v869_v38 = vsel %vm621_vm7, %v863_v42, %v865_v63 }
 0x2fe   : > { %v875_v48 = vadd.f32 %v869_v38, %v846_v47 }
 0x300   : > { %v867_v11 = vpop.permute.xlu1 %866 }
 0x301   : > { %v870_v1 = vsel %vm621_vm7, %v865_v63, %v867_v11 }
 0x302   : > { %v876_v0 = vadd.f32 %v870_v1, %v847_v6 }
 0x304   : > { %v904_v51 = vpop.permute.xlu1 %903 }
 0x308   : > { %v908_v12 = vpop.permute.xlu1 %907 }
 0x309   : > { %v883_v46 = vpop.permute.xlu0 %882 }
 0x30a   : > { %v885_v39 = vmul.f32 %v883_v46, %v2634_v32  ;;  %v886_v43 = vmul.f32 %v883_v46, %v2627_v61  ;;  %v887_v5 = vmul.f32 %v883_v46, %v2646_v2 }
 0x30c   : > { %v933_v36 = vpop.permute.xlu1 %932  ;;  %v888_v27 = vadd.f32 %v885_v39, %v874_v44  ;;  %v889_v22 = vadd.f32 %v886_v43, %v875_v48  ;;  %v890_v10 = vadd.f32 %v887_v5, %v876_v0 }
 0x30d   : > { %v906_v4 = vpop.permute.xlu0 %905 }
 0x30e   : > { %v911_v53 = vsel %vm411_vm0, %v904_v51, %v906_v4  ;;  %v912_v52 = vsel %vm411_vm0, %v906_v4, %v908_v12 }
 0x30f   : > { %v917_v54 = vadd.f32 %v911_v53, %v888_v27  ;;  %v918_v61 = vadd.f32 %v912_v52, %v889_v22 }
 0x310   : > { %v937_v3 = vpop.permute.xlu1 %936 }
 0x311   : > { %v910_v13 = vpop.permute.xlu0 %909 }
 0x312   : > { %v913_v9 = vsel %vm411_vm0, %v908_v12, %v910_v13 }
 0x313   : > { %v919_v6 = vadd.f32 %v913_v9, %v890_v10 }
 0x314   : > { %v962_v14 = vpop.permute.xlu1 %961 }
 0x315   : > { %v935_v19 = vpop.permute.xlu0 %934 }
 0x316   : > { %v940_v8 = vsel %vm441_vm1, %v933_v36, %v935_v19  ;;  %v941_v32 = vsel %vm441_vm1, %v935_v19, %v937_v3 }
 0x317   : > { %v946_v18 = vadd.f32 %v940_v8, %v917_v54  ;;  %v947_v16 = vadd.f32 %v941_v32, %v918_v61 }
 0x318   : > { %v966_v59 = vpop.permute.xlu1 %965 }
 0x319   : > { %v939_v20 = vpop.permute.xlu0 %938 }
 0x31a   : > { %v942_v62 = vsel %vm441_vm1, %v937_v3, %v939_v20  ;;  %v2755_v3 = vshrl.u32 %v1129_v28, 7 }
 0x31b   : > { %v948_v46 = vadd.f32 %v942_v62, %v919_v6 }
 0x31c   : > { %v991_v41 = vpop.permute.xlu1 %990  ;;  %v1153_v39 = vsub.s32 1, %v2755_v3  ;;  %v1197_v27 = vsub.s32 3, %v2755_v3  ;;  %v1263_v28 = vsub.s32 6, %v2755_v3 }
 0x31d   : > { %v964_v21 = vpop.permute.xlu0 %963 }
 0x31e   : > { %v969_v58 = vsel %vm471_vm2, %v962_v14, %v964_v21  ;;  %v970_v7 = vsel %vm471_vm2, %v964_v21, %v966_v59 }
 0x31f   : > { %v975_v56 = vadd.f32 %v969_v58, %v946_v18  ;;  %v976_v40 = vadd.f32 %v970_v7, %v947_v16  ;;  %v1219_v18 = vsub.s32 4, %v2755_v3 }
 0x320   : > { %v995_v23 = vpop.permute.xlu1 %994 }
 0x321   : > { %v968_v15 = vpop.permute.xlu0 %967 }
 0x322   : > { %v971_v11 = vsel %vm471_vm2, %v966_v59, %v968_v15 }
 0x324   : > { %v1020_v26 = vpop.permute.xlu1 %1019 }
 0x325   : > { %v993_v25 = vpop.permute.xlu0 %992 }
 0x326   : > { %v998_v2 = vsel %vm501_vm3, %v991_v41, %v993_v25  ;;  %v999_v24 = vsel %vm501_vm3, %v993_v25, %v995_v23  ;;  %v977_v41 = vadd.f32 %v971_v11, %v948_v46 }
 0x327   : > { %v1004_v51 = vadd.f32 %v998_v2, %v975_v56  ;;  %v1005_v42 = vadd.f32 %v999_v24, %v976_v40 }
 0x328   : > { %v1024_v30 = vpop.permute.xlu1 %1023 }
 0x329   : > { %v997_v29 = vpop.permute.xlu0 %996 }
 0x32a   : > { %v1000_v13 = vsel %vm501_vm3, %v995_v23, %v997_v29 }
 0x32c   : > { %v1049_v45 = vpop.permute.xlu1 %1048 }
 0x32d   : > { %v1022_v31 = vpop.permute.xlu0 %1021 }
 0x32e   : > { %v1027_v60 = vsel %vm531_vm4, %v1020_v26, %v1022_v31  ;;  %v1028_v63 = vsel %vm531_vm4, %v1022_v31, %v1024_v30  ;;  %v1006_v31 = vadd.f32 %v1000_v13, %v977_v41 }
 0x32f   : > { %v1033_v14 = vadd.f32 %v1027_v60, %v1004_v51  ;;  %v1034_v19 = vadd.f32 %v1028_v63, %v1005_v42 }
 0x330   : > { %v1053_v34 = vpop.permute.xlu1 %1052 }
 0x331   : > { %v1026_v17 = vpop.permute.xlu0 %1025 }
 0x332   : > { %v1029_v15 = vsel %vm531_vm4, %v1024_v30, %v1026_v17  ;;  %v1175_v30 = vsub.s32 2, %v2755_v3 }
 0x333   : > { %v1035_v43 = vadd.f32 %v1029_v15, %v1006_v31 }
 0x334   : > { %v1078_v50 = vpop.permute.xlu1 %1077 }
 0x335   : > { %v1051_v33 = vpop.permute.xlu0 %1050 }
 0x336   : > { %v1056_v36 = vsel %vm561_vm5, %v1049_v45, %v1051_v33  ;;  %v1057_v4 = vsel %vm561_vm5, %v1051_v33, %v1053_v34  ;;  %v1131_v45 = vsub.s32 0, %v2755_v3 }
 0x337   : > { %v1062_v25 = vadd.f32 %v1056_v36, %v1033_v14  ;;  %v1063_v26 = vadd.f32 %v1057_v4, %v1034_v19 }
 0x338   : > { %v1082_v55 = vpop.permute.xlu1 %1081 }
 0x339   : > { %v1055_v35 = vpop.permute.xlu0 %1054 }
 0x33a   : > { %v1058_v33 = vsel %vm561_vm5, %v1053_v34, %v1055_v35  ;;  %v2773_v35 = vsub.s32 5, %v2755_v3 }
 0x33b   : > { %v1064_v34 = vadd.f32 %v1058_v33, %v1035_v43 }
 0x33d   : > { %v1080_v49 = vpop.permute.xlu0 %1079 }
 0x33e   : > { %v1085_v21 = vsel %vm591_vm6, %v1078_v50, %v1080_v49  ;;  %v1086_v59 = vsel %vm591_vm6, %v1080_v49, %v1082_v55 }
 0x33f   : > { %v1091_v37 = vadd.f32 %v1085_v21, %v1062_v25  ;;  %v1092_v38 = vadd.f32 %v1086_v59, %v1063_v26 }
 0x341   : > { %v1084_v57 = vpop.permute.xlu0 %1083 }
 0x342   : > { %v1087_v17 = vsel %vm591_vm6, %v1082_v55, %v1084_v57 }
 0x343   : > { %v1093_v8 = vadd.f32 %v1087_v17, %v1064_v34 }
 0x345   : > { %v2751_v12 = vpop.permute.xlu0 %1148 }
 0x349   : > { %v2746_v47 = vpop.permute.xlu1 %1126  ;;  %v1111_v23 = vpop.permute.xlu0 %1110 }
 0x34d   : > { %v1107_v20 = vpop.permute.xlu1 %1106  ;;  %v1171_v7 = vpop.permute.xlu0 %1170 }
 0x351   : > { %v1109_v29 = vpop.permute.xlu1 %1108 }
 0x352   : > { %v1114_v44 = vsel %vm621_vm7, %v1107_v20, %v1109_v29  ;;  %v1115_v48 = vsel %vm621_vm7, %v1109_v29, %v1111_v23  ;;  %v1237_v41 = vpop.permute.xlu0 %1236 }
 0x353   : > { %v2768_v50 = vadd.f32 %v1114_v44, %v1091_v37  ;;  %v2770_v49 = vadd.f32 %v1115_v48, %v1092_v38 }
 0x355   : > { %v1132_v22 = vrot.slane %v2768_v50, %v1131_v45  ;;  %v1136_v53 = vrot.slane %v2770_v49, %v1131_v45  ;;  %v1154_v52 = vrot.slane %v2768_v50, %v1153_v39  ;;  %v1158_v1 = vrot.slane %v2770_v49, %v1153_v39  ;;  %v1113_v5 = vpop.permute.xlu1 %1112 }
 0x356   : > { %v1176_v32 = vrot.slane %v2768_v50, %v1175_v30  ;;  %v1180_v54 = vrot.slane %v2770_v49, %v1175_v30  ;;  %v1116_v61 = vsel %vm621_vm7, %v1111_v23, %v1113_v5  ;;  %v1242_v56 = vrot.slane %v2768_v50, %v2773_v35 }
 0x357   : > { %v1141_v55 = vmul.f32 %v1132_v22, %v2746_v47  ;;  %v1142_v57 = vmul.f32 %v1136_v53, %v2746_v47  ;;  %v1163_v0 = vmul.f32 %v1154_v52, %v2751_v12  ;;  %v1164_v58 = vmul.f32 %v1158_v1, %v2751_v12 }
 0x358   : > { %v2787_v9 = vadd.f32 %v1116_v61, %v1093_v8  ;;  %v1185_v2 = vmul.f32 %v1176_v32, %v1171_v7  ;;  %v1186_v62 = vmul.f32 %v1180_v54, %v1171_v7  ;;  %v1198_v11 = vrot.slane %v2768_v50, %v1197_v27 }
 0x359   : > { %v1166_v16 = vadd.f32 %v1163_v0, %v1141_v55  ;;  %v1167_v10 = vadd.f32 %v1164_v58, %v1142_v57  ;;  %v1193_v24 = vpop.permute.xlu1 %1192  ;;  %v1202_v51 = vrot.slane %v2770_v49, %v1197_v27  ;;  %v1246_v13 = vrot.slane %v2770_v49, %v2773_v35 }
 0x35a   : > { %v1140_v40 = vrot.slane %v2787_v9, %v1131_v45  ;;  %v1162_v6 = vrot.slane %v2787_v9, %v1153_v39  ;;  %v1184_v63 = vrot.slane %v2787_v9, %v1175_v30  ;;  %v1206_v4 = vrot.slane %v2787_v9, %v1197_v27 }
 0x35b   : > { %v1188_v60 = vadd.f32 %v1185_v2, %v1166_v16  ;;  %v1189_v42 = vadd.f32 %v1186_v62, %v1167_v10  ;;  %v1207_v14 = vmul.f32 %v1198_v11, %v1193_v24  ;;  %v1208_v19 = vmul.f32 %v1202_v51, %v1193_v24  ;;  %v1305_v2 = vpop.permute.xlu0 %1304 }
 0x35c   : > { %v1143_v46 = vmul.f32 %v1140_v40, %v2746_v47  ;;  %v1165_v36 = vmul.f32 %v1162_v6, %v2751_v12  ;;  %v1220_v20 = vrot.slane %v2768_v50, %v1219_v18  ;;  %v1187_v59 = vmul.f32 %v1184_v63, %v1171_v7 }
 0x35d   : > { %v1224_v15 = vrot.slane %v2770_v49, %v1219_v18  ;;  %v1250_v47 = vrot.slane %v2787_v9, %v2773_v35  ;;  %v1209_v12 = vmul.f32 %v1206_v4, %v1193_v24  ;;  %v1210_v26 = vadd.f32 %v1207_v14, %v1188_v60 }
 0x35e   : > { %v1168_v21 = vadd.f32 %v1165_v36, %v1143_v46  ;;  %v1215_v25 = vpop.permute.xlu1 %1214  ;;  %v1211_v33 = vadd.f32 %v1208_v19, %v1189_v42  ;;  %v1228_v37 = vrot.slane %v2787_v9, %v1219_v18  ;;  %v1251_v23 = vmul.f32 %v1242_v56, %v1237_v41 }
 0x35f   : > { %v1229_v31 = vmul.f32 %v1220_v20, %v1215_v25  ;;  %v1230_v38 = vmul.f32 %v1224_v15, %v1215_v25  ;;  %v1252_v29 = vmul.f32 %v1246_v13, %v1237_v41  ;;  %v1264_v43 = vrot.slane %v2768_v50, %v1263_v28 }
 0x360   : > { %v1190_v45 = vadd.f32 %v1187_v59, %v1168_v21  ;;  %v1231_v48 = vmul.f32 %v1228_v37, %v1215_v25  ;;  %v1268_v17 = vrot.slane %v2770_v49, %v1263_v28  ;;  %v1253_v34 = vmul.f32 %v1250_v47, %v1237_v41 }
 0x361   : > { %v1232_v39 = vadd.f32 %v1229_v31, %v1210_v26  ;;  %v1233_v30 = vadd.f32 %v1230_v38, %v1211_v33  ;;  %v1272_v27 = vrot.slane %v2787_v9, %v1263_v28  ;;  %v1285_v53 = vsub.s32 7, %v2755_v3 }
 0x362   : > { %v1212_v44 = vadd.f32 %v1209_v12, %v1190_v45 }
 0x363   : > { %v1254_v35 = vadd.f32 %v1251_v23, %v1232_v39  ;;  %v1259_v22 = vpop.permute.xlu1 %1258  ;;  %v1255_v1 = vadd.f32 %v1252_v29, %v1233_v30  ;;  %v1286_v61 = vrot.slane %v2768_v50, %v1285_v53  ;;  %v1290_v55 = vrot.slane %v2770_v49, %v1285_v53 }
 0x364   : > { %v1234_v52 = vadd.f32 %v1231_v48, %v1212_v44  ;;  %v1273_v5 = vmul.f32 %v1264_v43, %v1259_v22  ;;  %v1274_v8 = vmul.f32 %v1268_v17, %v1259_v22  ;;  %v1275_v32 = vmul.f32 %v1272_v27, %v1259_v22 }
 0x365   : > { %v1294_v57 = vrot.slane %v2787_v9, %v1285_v53 }
 0x366   : > { %v1256_v54 = vadd.f32 %v1253_v34, %v1234_v52  ;;  %v1276_v0 = vadd.f32 %v1273_v5, %v1254_v35  ;;  %v1277_v58 = vadd.f32 %v1274_v8, %v1255_v1 }
 0x368   : > { %v1281_v7 = vpop.permute.xlu1 %1280  ;;  %v1278_v18 = vadd.f32 %v1275_v32, %v1256_v54 }
 0x369   : > { %v1295_v3 = vmul.f32 %v1286_v61, %v1281_v7  ;;  %v1296_v16 = vmul.f32 %v1290_v55, %v1281_v7  ;;  %v1297_v10 = vmul.f32 %v1294_v57, %v1281_v7 }
 0x36b   : > { %v1298_v50 = vadd.f32 %v1295_v3, %v1276_v0  ;;  %v1299_v24 = vadd.f32 %v1296_v16, %v1277_v58  ;;  %v1300_v49 = vadd.f32 %v1297_v10, %v1278_v18 }
 0x36d   : > { %v1307_v28 = vadd.f32 %v1305_v2, %v1298_v50  ;;  %v1308_v9 = vadd.f32 %v1305_v2, %v1299_v24  ;;  %v1309_v62 = vadd.f32 %v1305_v2, %v1300_v49 }
 0x36f   : > { %1310 = vst [vmem:[%s372_s3] sm:$0xff] %v1307_v28  ;;  %1311 = vst [vmem:[%s372_s3 + $0x8] sm:$0xff] %v1308_v9 }
 0x370   : > { %1312 = vst [vmem:[%s372_s3 + $0x10] sm:$0xff] %v1309_v62 }
 0x371   : > { %1804 = shalt.err (!%p1801_p3)
}
 0x372   : > { %s1805_s14 = scalar_lea.hbm %s2823_s9, 384  ;;  %s1809_s4 = scalar_lea.hbm %s2968_s15, 6144 }
 0x373   : > { %p1806_p5 = scmp.ne.s32.totalorder %s2823_s9, %s1805_s14  ;;  %p1810_p6 = scmp.lt.u32.totalorder %s2823_s9, %s2968_s15 }
 0x374   : > { %p1811_p13 = scmp.lt.u32.totalorder %s1809_s4, %s1805_s14  ;;  %p1813_p9 = scmp.lt.u32.totalorder %s1805_s14, %s2823_s9 }
 0x375   : > { %p1807_p10 = pnand %p1806_p5, %p2969_p12 }
 0x376   : > { %p1812_p0 = por %p1811_p13, %p1810_p6 }
 0x377   : > { %p1808_p8 = pneg %p1807_p10 }
 0x378   : > { %p1814_p1 = por %p1813_p9, %p1812_p0 }
 0x37a   : > { %p1815_p2 = pnand %p1814_p1, %p1808_p8 }
 0x37c   : > { %1818 = shalt.err (!%p1815_p2)
}
 0x37d   : > { %1498 = dma.vmem_to_hbm [thread:$0]  (%p2969_p12), %s2825_s18, 384, %s2823_s9, %s1314_s5  }
 0x37e PF: > { %p1515_p4 = scmp.ge.s32.totalorder %s1945_s10, 2  ;;  %s1342_s21 = sand.u32 1, %s1917_s27  }
 0x37f   : > { %p2970_p11 = scmp.ne.s32.totalorder %s2948_s12, 0  ;;  %s1343_s20 = scalar_lea.sflag [#allocation4], %s1342_s21 }
 0x381   : > { %p1511_p7 = pnand %p1515_p4, %p2970_p11 }
 0x383   : > { %1888 = dma.done.wait (!%p1511_p7), %s1343_s20, 384  }
 0x384   : > { %1890 = vsyncadd (!%p1511_p7), %s1343_s20, 4294966912  ;;  %s25_s10 = sadd.s32 1, %s1945_s10   ;;  %s2972_s17 = sld [smem:[#allocation13_spill]] }
 0x385   : > { %p2854_p3 = scmp.ge.s32.totalorder %s25_s10, 18   ;;  %s2973_s18 = sld [smem:[#allocation20_spill]] }
 0x386   : > { %s2974_s9 = smov %s2204_s24  ;;  %s2975_s12 = sld [smem:[#allocation16_spill]] }
 0x387   : > { %s2976_s5 = sld [smem:[#allocation17_spill]]  ;;  %s2977_s11 = sld [smem:[#allocation18_spill]] }
 0x388   : > { %s2979_s21 = smov %s1897_s22  ;;  %s2980_s22 = smov %s1901_s23 }
 0x389   : > { %s2981_s23 = smov %s2271_s13  ;;  %s2983_s25 = smov %s1913_s26 }
 0x38a   : > { %s2982_s24 = smov %s2972_s17  ;;  %s2985_s27 = smov %s1921_s28 }
 0x38b   : > { %s2984_s26 = smov %s2973_s18  ;;  %s2986_s28 = smov %s1925_s29 }
 0x38c   : > { %s2987_s29 = smov %s2974_s9  ;;  %s2988_s30 = smov %s1937_s8 }
 0x38d   : > { %s2989_s7 = smov %s2975_s12  ;;  %s2990_s8 = smov %s2976_s5 }
 0x38e   : > { %s2991_s9 = smov %s2977_s11  ;;  %24 = sbr.rel (!%p2854_p3) target bundleno = 18 (0x12), region = 113 }
 0x395   :  { %1348 = vsyncpa [#allocation3], 1 }
 0x396   :  { %1350 = vsyncpa [#allocation3 + $0x1], 1 }
 0x397   :  { %1351 = vsyncpa [#allocation6], 1 }
 0x398   :  { %1353 = vsyncpa [#allocation6 + $0x1], 1 }
 0x399   :  { %1354 = vsyncpa [#allocation4], 1 }
 0x39a   :  { %1356 = vsyncpa [#allocation4 + $0x1], 1 }

</bundles_post_ra>
